<compile_context>
chip_gen: v7x
topology: tpu7x:2x2x1
jax: 0.10.0
libtpu: 0.0.40
codegen_flags: <defaults>
</compile_context>

<pallas_src>
import functools

import numpy as np
import jax
import jax.numpy as jnp
from jax.experimental import pallas as pl
from jax.experimental.pallas import tpu as pltpu

BN_EPS = 1e-5
# MXU input precision (accumulation stays f32).  bf16 is the fast MXU path on
# v5e/v6e/v7x per the perf review; flip to jnp.float32 for bit-accurate runs.
MXU_DTYPE = jnp.bfloat16


# ---------------------------------------------------------------------------
# trace-time constant builders (pure numpy -> embedded literals, no XLA ops)
# ---------------------------------------------------------------------------
def _round_up(x, m):
    return ((x + m - 1) // m) * m


def _make_onehot(wp, ow, kw, stride):
    """onehot[j, w_in, w_out] = 1 iff w_in == stride*w_out + j."""
    oh = np.zeros((kw, wp, ow), np.float32)
    for j in range(kw):
        for o in range(ow):
            oh[j, stride * o + j, o] = 1.0
    return oh


def _make_row_select(n, oh_out, hp_in, kh, stride):
    """sel[i*M + (b*oh_out + o), b*hp_in + stride*o + i] = 1   (M = n*oh_out).

    Left-multiplying the padded row-flattened activation by this matrix yields,
    for every kernel-row tap i, the input row needed by each output row.
    """
    sel = np.zeros((kh, n * oh_out, n * hp_in), np.float32)
    for i in range(kh):
        for b in range(n):
            for o in range(oh_out):
                sel[i, b * oh_out + o, b * hp_in + stride * o + i] = 1.0
    return sel.reshape(kh * n * oh_out, n * hp_in)


def _make_chan_proj(ow, c):
    """proj[(w,c),(w',c')] = (c == c'): right-multiply sums a (w,c)-flattened
    row vector over w per channel (used for the BatchNorm reductions)."""
    return np.tile(np.eye(c, dtype=np.float32), (ow, ow))


# ---------------------------------------------------------------------------
# weight repacking (runs in the jitted wrapper; one einsum per conv layer)
# ---------------------------------------------------------------------------
def _make_bigw(w, wp, ow, stride, k_pad=None):
    """PyTorch OIHW conv weight -> per-kernel-row banded matmul weights.

    Returns [kh, K, ow*cout] with K = wp*cin (optionally zero-padded to k_pad):
    BigW[i, w_in*cin + ci, w_out*cout + co] = w[co, ci, i, j] iff w_in == stride*w_out + j.
    """
    cout, cin, kh, kw = w.shape
    onehot = jnp.asarray(_make_onehot(wp, ow, kw, stride))
    r = jnp.einsum("jpo,dcij->ipcod", onehot, w.astype(jnp.float32))
    big = r.reshape(kh, wp * cin, ow * cout)
    if k_pad is not None and k_pad > wp * cin:
        big = jnp.pad(big, ((0, 0), (0, k_pad - wp * cin), (0, 0)))
    return big.astype(MXU_DTYPE)


def _make_w4map(w4, n):
    """conv4 weight as an [n*k4, k4*c3] map aligned with the conv3 output rows."""
    c3, k4 = w4.shape[1], w4.shape[2]
    m = jnp.transpose(w4[0], (1, 2, 0)).reshape(k4, k4 * c3)  # row=h, col=(w,c)
    return jnp.tile(m.astype(jnp.float32), (n, 1))


# ---------------------------------------------------------------------------
# the fused Pallas kernel
# ---------------------------------------------------------------------------
def _dcd_kernel(a0_ref,
                sel1_ref, bw1_ref, p1_ref, g1_ref, b1_ref,
                sel2_ref, bw2_ref, p2_ref, g2_ref, b2_ref,
                sel3_ref, bw3_ref, p3_ref, g3_ref, b3_ref,
                w4m_ref, selb_ref,
                out_ref,
                a1_ref, a2_ref,
                *, n, c1, c2, c3, oh1, oh2, oh3):
    """Whole DCDiscriminator forward; all activations stay resident in VMEM."""

    def conv_bn_relu(a_bf16, sel_ref, bw_ref, proj_ref, g_ref, b_ref, m_rows, ow):
        # One MXU call gathers the 3 kernel-row taps for every output row.
        lhs = jnp.dot(sel_ref[...], a_bf16, preferred_element_type=jnp.float32)
        lhs = lhs.astype(MXU_DTYPE)
        n_cols = bw_ref.shape[2]
        acc = jnp.zeros((m_rows, n_cols), jnp.float32)
        for i in range(3):                         # static unroll over kernel rows
            acc = acc + jnp.dot(lhs[i * m_rows:(i + 1) * m_rows, :], bw_ref[i],
                                preferred_element_type=jnp.float32)
        # BatchNorm: training-mode batch statistics over (N, H, W), biased var.
        inv = 1.0 / float(m_rows * ow)
        colsum = jnp.sum(acc, axis=0, keepdims=True)                      # [1, ow*c]
        mean_e = jnp.dot(colsum, proj_ref[...],
                         preferred_element_type=jnp.float32) * inv        # channel mean, tiled over w
        cen = acc - mean_e
        sqsum = jnp.sum(cen * cen, axis=0, keepdims=True)
        var_e = jnp.dot(sqsum, proj_ref[...],
                        preferred_element_type=jnp.float32) * inv         # channel var, tiled over w
        y = cen * jax.lax.rsqrt(var_e + BN_EPS) * g_ref[...] + b_ref[...]
        return jnp.maximum(y, 0.0)

    def write_padded(dst_ref, r, oh, c):
        # Store the [n*oh, oh*c] layer output into the next layer's zero-padded,
        # row-flattened scratch using plain contiguous block stores.
        hp = oh + 2
        dst_ref[...] = jnp.zeros(dst_ref.shape, jnp.float32)
        for b in range(n):                         # static unroll over batch
            dst_ref[b * hp + 1: b * hp + 1 + oh, c: c + oh * c] = \
                r[b * oh:(b + 1) * oh, :]

    # conv1 -> BN -> ReLU
    r1 = conv_bn_relu(a0_ref[...], sel1_ref, bw1_ref, p1_ref, g1_ref, b1_ref,
                      n * oh1, oh1)
    write_padded(a1_ref, r1, oh1, c1)
    # conv2 -> BN -> ReLU
    r2 = conv_bn_relu(a1_ref[...].astype(MXU_DTYPE), sel2_ref, bw2_ref, p2_ref,
                      g2_ref, b2_ref, n * oh2, oh2)
    write_padded(a2_ref, r2, oh2, c2)
    # conv3 -> BN -> ReLU
    r3 = conv_bn_relu(a2_ref[...].astype(MXU_DTYPE), sel3_ref, bw3_ref, p3_ref,
                      g3_ref, b3_ref, n * oh3, oh3)
    # conv4 (k=4, s=1, p=0 on the 4x4 map == full contraction) + sigmoid
    srow = jnp.sum(r3 * w4m_ref[...], axis=1, keepdims=True)              # [n*oh3, 1]
    logits = jnp.dot(selb_ref[...], srow, preferred_element_type=jnp.float32)
    out_ref[...] = jax.nn.sigmoid(logits)                                  # [n, 1]


def _full_spec(shape):
    nd = len(shape)
    return pl.BlockSpec(shape, lambda i, _nd=nd: (0,) * _nd)


# ---------------------------------------------------------------------------
# forward wrapper
# ---------------------------------------------------------------------------
@jax.jit
def dc_discriminator_forward(params, x):
    n, cin, h, w = x.shape
    assert cin == 3 and h == w, "expects square NCHW RGB input"
    c1 = params["w1"].shape[0]
    c2 = params["w2"].shape[0]
    c3 = params["w3"].shape[0]
    k4 = params["w4"].shape[2]
    oh1 = (h + 2 - 3) // 2 + 1
    oh2 = (oh1 + 2 - 3) // 2 + 1
    oh3 = (oh2 + 2 - 3) // 2 + 1
    assert oh3 == k4, "conv4 must cover conv3's full spatial output (use 32x32 inputs)"
    hp0, hp1, hp2 = h + 2, oh1 + 2, oh2 + 2
    k1 = hp0 * cin
    k1p = _round_up(k1, 128)          # lane-dense K for the conv1 matmul

    # Input: NCHW -> zero-padded, row-flattened NHWC rows [n*hp0, k1p] (bf16).
    xp = jnp.pad(x, ((0, 0), (0, 0), (1, 1), (1, 1)))
    a0 = jnp.transpose(xp, (0, 2, 3, 1)).reshape(n * hp0, k1)
    a0 = jnp.pad(a0, ((0, 0), (0, k1p - k1))).astype(MXU_DTYPE)

    # Data-independent selection / reduction matrices (trace-time constants).
    sel1 = jnp.asarray(_make_row_select(n, oh1, hp0, 3, 2), MXU_DTYPE)
    sel2 = jnp.asarray(_make_row_select(n, oh2, hp1, 3, 2), MXU_DTYPE)
    sel3 = jnp.asarray(_make_row_select(n, oh3, hp2, 3, 2), MXU_DTYPE)
    p1 = jnp.asarray(_make_chan_proj(oh1, c1))
    p2 = jnp.asarray(_make_chan_proj(oh2, c2))
    p3 = jnp.asarray(_make_chan_proj(oh3, c3))
    selb = jnp.asarray(np.kron(np.eye(n, dtype=np.float32),
                               np.ones((1, oh3), np.float32)))

    # Weight repacking (one einsum per conv layer; could be hoisted and cached).
    bw1 = _make_bigw(params["w1"], hp0, oh1, 2, k_pad=k1p)
    bw2 = _make_bigw(params["w2"], hp1, oh2, 2)
    bw3 = _make_bigw(params["w3"], hp2, oh3, 2)
    w4m = _make_w4map(params["w4"], n)

    def tiled(v, ow):
        return jnp.tile(v.astype(jnp.float32), ow).reshape(1, ow * v.shape[0])

    g1, b1 = tiled(params["g1"], oh1), tiled(params["b1"], oh1)
    g2, b2 = tiled(params["g2"], oh2), tiled(params["b2"], oh2)
    g3, b3 = tiled(params["g3"], oh3), tiled(params["b3"], oh3)

    kernel = functools.partial(_dcd_kernel, n=n, c1=c1, c2=c2, c3=c3,
                               oh1=oh1, oh2=oh2, oh3=oh3)
    args = (a0, sel1, bw1, p1, g1, b1,
            sel2, bw2, p2, g2, b2,
            sel3, bw3, p3, g3, b3,
            w4m, selb)

    # TODO(synk): for large batches this single-block design should become an
    # M-tiled grid (two-pass BatchNorm across tiles, "parallel" M axis for the
    # v7x dual TensorCores, halved tiles for its 64 MiB VMEM).  At these shapes
    # the whole working set is < 1 MB, so one VMEM-resident block is optimal.
    out = pl.pallas_call(
        kernel,
        grid=(1,),
        in_specs=[_full_spec(a.shape) for a in args],
        out_specs=_full_spec((n, 1)),
        out_shape=jax.ShapeDtypeStruct((n, 1), jnp.float32),
        scratch_shapes=[
            pltpu.VMEM((n * hp1, hp1 * c1), jnp.float32),   # padded conv1 activation
            pltpu.VMEM((n * hp2, hp2 * c2), jnp.float32),   # padded conv2 activation
        ],
        compiler_params=pltpu.CompilerParams(
            dimension_semantics=("arbitrary",)),
    )(*args)

    # Matches torch's `.squeeze()` on the (N,1,1,1) conv4 output.
    return jnp.squeeze(out)


# ---------------------------------------------------------------------------
# params + plain-JAX reference (for a loose in-script cross-check)
# ---------------------------------------------------------------------------
def init_params(key, conv_dim):
    ks = jax.random.split(key, 4)

    def w(k, cout, cin, ksz):
        scale = 1.0 / jnp.sqrt(cin * ksz * ksz)
        return jax.random.uniform(k, (cout, cin, ksz, ksz), jnp.float32, -scale, scale)

    return {
        "w1": w(ks[0], conv_dim, 3, 3),
        "g1": jnp.ones((conv_dim,), jnp.float32),
        "b1": jnp.zeros((conv_dim,), jnp.float32),
        "w2": w(ks[1], conv_dim * 2, conv_dim, 3),
        "g2": jnp.ones((conv_dim * 2,), jnp.float32),
        "b2": jnp.zeros((conv_dim * 2,), jnp.float32),
        "w3": w(ks[2], conv_dim * 4, conv_dim * 2, 3),
        "g3": jnp.ones((conv_dim * 4,), jnp.float32),
        "b3": jnp.zeros((conv_dim * 4,), jnp.float32),
        "w4": w(ks[3], 1, conv_dim * 4, 4),
    }


@jax.jit
def _reference_forward(params, x):
    def conv2d(v, wt, stride, padding):
        return jax.lax.conv_general_dilated(
            v, wt, window_strides=(stride, stride),
            padding=[(padding, padding), (padding, padding)],
            dimension_numbers=("NCHW", "OIHW", "NCHW"))

    def bn(y, g, b):
        mean = jnp.mean(y, axis=(0, 2, 3), keepdims=True)
        var = jnp.mean(jnp.square(y - mean), axis=(0, 2, 3), keepdims=True)
        return ((y - mean) * jax.lax.rsqrt(var + BN_EPS)
                * g.reshape(1, -1, 1, 1) + b.reshape(1, -1, 1, 1))

    out = jax.nn.relu(bn(conv2d(x, params["w1"], 2, 1), params["g1"], params["b1"]))
    out = jax.nn.relu(bn(conv2d(out, params["w2"], 2, 1), params["g2"], params["b2"]))
    out = jax.nn.relu(bn(conv2d(out, params["w3"], 2, 1), params["g3"], params["b3"]))
    out = conv2d(out, params["w4"], 1, 0)
    return jax.nn.sigmoid(jnp.squeeze(out))


if __name__ == "__main__":
    key = jax.random.PRNGKey(0)
    k_param, k_x = jax.random.split(key)

    conv_dim = 8
    # 32x32 input: 32 -> 16 -> 8 -> 4 -> (k=4 valid) -> 1x1
    x = jax.random.normal(k_x, (2, 3, 32, 32), jnp.float32)
    params = init_params(k_param, conv_dim)

    out = dc_discriminator_forward(params, x)
    out = jax.block_until_ready(out)

    assert out.shape == (2,), out.shape
    assert jnp.all(jnp.isfinite(out)) and jnp.all(out >= 0) and jnp.all(out <= 1)

    # cross-check vs. plain-JAX f32 reference (bf16 MXU inputs -> loose tol)
    ref = jax.block_until_ready(_reference_forward(params, x))
    assert jnp.max(jnp.abs(out - ref)) < 5e-2, (out, ref)

    print("KERNEL_OK")
</pallas_src>

<mosaic_0001>
module attributes {stable_mosaic.version = 11 : i64} {
  func.func @_dcd_kernel(%arg0: i32, %arg1: memref<68x128xbf16, #tpu.memory_space<vmem>>, %arg2: memref<96x68xbf16, #tpu.memory_space<vmem>>, %arg3: memref<3x128x128xbf16, #tpu.memory_space<vmem>>, %arg4: memref<128x128xf32, #tpu.memory_space<vmem>>, %arg5: memref<1x128xf32, #tpu.memory_space<vmem>>, %arg6: memref<1x128xf32, #tpu.memory_space<vmem>>, %arg7: memref<48x36xbf16, #tpu.memory_space<vmem>>, %arg8: memref<3x144x128xbf16, #tpu.memory_space<vmem>>, %arg9: memref<128x128xf32, #tpu.memory_space<vmem>>, %arg10: memref<1x128xf32, #tpu.memory_space<vmem>>, %arg11: memref<1x128xf32, #tpu.memory_space<vmem>>, %arg12: memref<24x20xbf16, #tpu.memory_space<vmem>>, %arg13: memref<3x160x128xbf16, #tpu.memory_space<vmem>>, %arg14: memref<128x128xf32, #tpu.memory_space<vmem>>, %arg15: memref<1x128xf32, #tpu.memory_space<vmem>>, %arg16: memref<1x128xf32, #tpu.memory_space<vmem>>, %arg17: memref<8x128xf32, #tpu.memory_space<vmem>>, %arg18: memref<2x8xf32, #tpu.memory_space<vmem>>, %arg19: memref<2x1xf32, #tpu.memory_space<vmem>>, %arg20: memref<36x144xf32, #tpu.memory_space<vmem>>, %arg21: memref<20x160xf32, #tpu.memory_space<vmem>>) attributes {dimension_semantics = [#tpu.dimension_semantics<arbitrary>], iteration_bounds = array<i64: 1>, scalar_prefetch = 0 : i64, scratch_operands = 2 : i64, tpu.core_type = #tpu.core_type<tc>, window_params = [{pipeline_mode = #tpu.pipeline_mode<synchronous>, transform_indices = @transform_0, window_bounds = array<i64: 68, 128>}, {pipeline_mode = #tpu.pipeline_mode<synchronous>, transform_indices = @transform_1, window_bounds = array<i64: 96, 68>}, {pipeline_mode = #tpu.pipeline_mode<synchronous>, transform_indices = @transform_2, window_bounds = array<i64: 3, 128, 128>}, {pipeline_mode = #tpu.pipeline_mode<synchronous>, transform_indices = @transform_3, window_bounds = array<i64: 128, 128>}, {pipeline_mode = #tpu.pipeline_mode<synchronous>, transform_indices = @transform_4, window_bounds = array<i64: 1, 128>}, {pipeline_mode = #tpu.pipeline_mode<synchronous>, transform_indices = @transform_5, window_bounds = array<i64: 1, 128>}, {pipeline_mode = #tpu.pipeline_mode<synchronous>, transform_indices = @transform_6, window_bounds = array<i64: 48, 36>}, {pipeline_mode = #tpu.pipeline_mode<synchronous>, transform_indices = @transform_7, window_bounds = array<i64: 3, 144, 128>}, {pipeline_mode = #tpu.pipeline_mode<synchronous>, transform_indices = @transform_8, window_bounds = array<i64: 128, 128>}, {pipeline_mode = #tpu.pipeline_mode<synchronous>, transform_indices = @transform_9, window_bounds = array<i64: 1, 128>}, {pipeline_mode = #tpu.pipeline_mode<synchronous>, transform_indices = @transform_10, window_bounds = array<i64: 1, 128>}, {pipeline_mode = #tpu.pipeline_mode<synchronous>, transform_indices = @transform_11, window_bounds = array<i64: 24, 20>}, {pipeline_mode = #tpu.pipeline_mode<synchronous>, transform_indices = @transform_12, window_bounds = array<i64: 3, 160, 128>}, {pipeline_mode = #tpu.pipeline_mode<synchronous>, transform_indices = @transform_13, window_bounds = array<i64: 128, 128>}, {pipeline_mode = #tpu.pipeline_mode<synchronous>, transform_indices = @transform_14, window_bounds = array<i64: 1, 128>}, {pipeline_mode = #tpu.pipeline_mode<synchronous>, transform_indices = @transform_15, window_bounds = array<i64: 1, 128>}, {pipeline_mode = #tpu.pipeline_mode<synchronous>, transform_indices = @transform_16, window_bounds = array<i64: 8, 128>}, {pipeline_mode = #tpu.pipeline_mode<synchronous>, transform_indices = @transform_17, window_bounds = array<i64: 2, 8>}, {pipeline_mode = #tpu.pipeline_mode<synchronous>, transform_indices = @transform_18, window_bounds = array<i64: 2, 1>}]} {
    %c0 = arith.constant 0 : index
    %c0_0 = arith.constant 0 : index
    %0 = vector.load %arg1[%c0, %c0_0] : memref<68x128xbf16, #tpu.memory_space<vmem>>, vector<68x128xbf16>
    %c0_1 = arith.constant 0 : index
    %c0_2 = arith.constant 0 : index
    %1 = vector.load %arg2[%c0_1, %c0_2] : memref<96x68xbf16, #tpu.memory_space<vmem>>, vector<96x68xbf16>
    %cst = arith.constant dense<0.000000e+00> : vector<96x128xf32>
    %2 = tpu.matmul %1, %0, %cst {dimension_numbers = #tpu.dot_dimension_numbers<[1], [0], [0], [1], [0, 0, 1, 1], [], []>} : vector<96x68xbf16>, vector<68x128xbf16>, vector<96x128xf32> -> vector<96x128xf32>
    %3 = arith.truncf %2 : vector<96x128xf32> to vector<96x128xbf16>
    %cst_3 = arith.constant 0.000000e+00 : f32
    %4 = vector.broadcast %cst_3 : f32 to vector<32x128xf32>
    %5 = vector.extract_strided_slice %3 {offsets = [0, 0], sizes = [32, 128], strides = [1, 1]} : vector<96x128xbf16> to vector<32x128xbf16>
    %c0_4 = arith.constant 0 : index
    %c0_5 = arith.constant 0 : index
    %c0_6 = arith.constant 0 : index
    %6 = vector.load %arg3[%c0_4, %c0_5, %c0_6] : memref<3x128x128xbf16, #tpu.memory_space<vmem>>, vector<1x128x128xbf16>
    %7 = vector.shape_cast %6 : vector<1x128x128xbf16> to vector<128x128xbf16>
    %cst_7 = arith.constant dense<0.000000e+00> : vector<32x128xf32>
    %8 = tpu.matmul %5, %7, %cst_7 {dimension_numbers = #tpu.dot_dimension_numbers<[1], [0], [0], [1], [0, 0, 1, 1], [], []>} : vector<32x128xbf16>, vector<128x128xbf16>, vector<32x128xf32> -> vector<32x128xf32>
    %9 = arith.addf %4, %8 : vector<32x128xf32>
    %10 = vector.extract_strided_slice %3 {offsets = [32, 0], sizes = [32, 128], strides = [1, 1]} : vector<96x128xbf16> to vector<32x128xbf16>
    %c1 = arith.constant 1 : index
    %c0_8 = arith.constant 0 : index
    %c0_9 = arith.constant 0 : index
    %11 = vector.load %arg3[%c1, %c0_8, %c0_9] : memref<3x128x128xbf16, #tpu.memory_space<vmem>>, vector<1x128x128xbf16>
    %12 = vector.shape_cast %11 : vector<1x128x128xbf16> to vector<128x128xbf16>
    %cst_10 = arith.constant dense<0.000000e+00> : vector<32x128xf32>
    %13 = tpu.matmul %10, %12, %cst_10 {dimension_numbers = #tpu.dot_dimension_numbers<[1], [0], [0], [1], [0, 0, 1, 1], [], []>} : vector<32x128xbf16>, vector<128x128xbf16>, vector<32x128xf32> -> vector<32x128xf32>
    %14 = arith.addf %9, %13 : vector<32x128xf32>
    %15 = vector.extract_strided_slice %3 {offsets = [64, 0], sizes = [32, 128], strides = [1, 1]} : vector<96x128xbf16> to vector<32x128xbf16>
    %c2 = arith.constant 2 : index
    %c0_11 = arith.constant 0 : index
    %c0_12 = arith.constant 0 : index
    %16 = vector.load %arg3[%c2, %c0_11, %c0_12] : memref<3x128x128xbf16, #tpu.memory_space<vmem>>, vector<1x128x128xbf16>
    %17 = vector.shape_cast %16 : vector<1x128x128xbf16> to vector<128x128xbf16>
    %cst_13 = arith.constant dense<0.000000e+00> : vector<32x128xf32>
    %18 = tpu.matmul %15, %17, %cst_13 {dimension_numbers = #tpu.dot_dimension_numbers<[1], [0], [0], [1], [0, 0, 1, 1], [], []>} : vector<32x128xbf16>, vector<128x128xbf16>, vector<32x128xf32> -> vector<32x128xf32>
    %19 = arith.addf %14, %18 : vector<32x128xf32>
    %cst_14 = arith.constant dense<0.000000e+00> : vector<128xf32>
    %20 = vector.multi_reduction <add>, %19, %cst_14 [0] : vector<32x128xf32> to vector<128xf32>
    %21 = vector.shape_cast %20 : vector<128xf32> to vector<1x128xf32>
    %c0_15 = arith.constant 0 : index
    %c0_16 = arith.constant 0 : index
    %22 = vector.load %arg4[%c0_15, %c0_16] : memref<128x128xf32, #tpu.memory_space<vmem>>, vector<128x128xf32>
    %cst_17 = arith.constant dense<0.000000e+00> : vector<1x128xf32>
    %23 = tpu.matmul %21, %22, %cst_17 {dimension_numbers = #tpu.dot_dimension_numbers<[1], [0], [0], [1], [0, 0, 1, 1], [], []>} : vector<1x128xf32>, vector<128x128xf32>, vector<1x128xf32> -> vector<1x128xf32>
    %cst_18 = arith.constant 0.001953125 : f32
    %24 = vector.broadcast %cst_18 : f32 to vector<1x128xf32>
    %25 = arith.mulf %23, %24 : vector<1x128xf32>
    %26 = vector.broadcast %25 : vector<1x128xf32> to vector<32x128xf32>
    %27 = arith.subf %19, %26 : vector<32x128xf32>
    %28 = arith.mulf %27, %27 : vector<32x128xf32>
    %cst_19 = arith.constant dense<0.000000e+00> : vector<128xf32>
    %29 = vector.multi_reduction <add>, %28, %cst_19 [0] : vector<32x128xf32> to vector<128xf32>
    %30 = vector.shape_cast %29 : vector<128xf32> to vector<1x128xf32>
    %c0_20 = arith.constant 0 : index
    %c0_21 = arith.constant 0 : index
    %31 = vector.load %arg4[%c0_20, %c0_21] : memref<128x128xf32, #tpu.memory_space<vmem>>, vector<128x128xf32>
    %cst_22 = arith.constant dense<0.000000e+00> : vector<1x128xf32>
    %32 = tpu.matmul %30, %31, %cst_22 {dimension_numbers = #tpu.dot_dimension_numbers<[1], [0], [0], [1], [0, 0, 1, 1], [], []>} : vector<1x128xf32>, vector<128x128xf32>, vector<1x128xf32> -> vector<1x128xf32>
    %cst_23 = arith.constant 0.001953125 : f32
    %33 = vector.broadcast %cst_23 : f32 to vector<1x128xf32>
    %34 = arith.mulf %32, %33 : vector<1x128xf32>
    %cst_24 = arith.constant 9.99999974E-6 : f32
    %35 = vector.broadcast %cst_24 : f32 to vector<1x128xf32>
    %36 = arith.addf %34, %35 : vector<1x128xf32>
    %37 = math.rsqrt %36 : vector<1x128xf32>
    %38 = vector.broadcast %37 : vector<1x128xf32> to vector<32x128xf32>
    %39 = arith.mulf %27, %38 : vector<32x128xf32>
    %c0_25 = arith.constant 0 : index
    %c0_26 = arith.constant 0 : index
    %40 = vector.load %arg5[%c0_25, %c0_26] : memref<1x128xf32, #tpu.memory_space<vmem>>, vector<1x128xf32>
    %41 = vector.broadcast %40 : vector<1x128xf32> to vector<32x128xf32>
    %42 = arith.mulf %39, %41 : vector<32x128xf32>
    %c0_27 = arith.constant 0 : index
    %c0_28 = arith.constant 0 : index
    %43 = vector.load %arg6[%c0_27, %c0_28] : memref<1x128xf32, #tpu.memory_space<vmem>>, vector<1x128xf32>
    %44 = vector.broadcast %43 : vector<1x128xf32> to vector<32x128xf32>
    %45 = arith.addf %42, %44 : vector<32x128xf32>
    %cst_29 = arith.constant 0.000000e+00 : f32
    %46 = vector.broadcast %cst_29 : f32 to vector<32x128xf32>
    %47 = arith.maximumf %45, %46 : vector<32x128xf32>
    %cst_30 = arith.constant 0.000000e+00 : f32
    %48 = vector.broadcast %cst_30 : f32 to vector<36x144xf32>
    %c0_31 = arith.constant 0 : index
    %c0_32 = arith.constant 0 : index
    %49 = vector.load %arg20[%c0_31, %c0_32] : memref<36x144xf32, #tpu.memory_space<vmem>>, vector<36x144xf32>
    tpu.vector_store %arg20[%c0_31, %c0_32], %48 {strides = array<i32>} : memref<36x144xf32, #tpu.memory_space<vmem>>, vector<36x144xf32>,
    %50 = vector.extract_strided_slice %47 {offsets = [0, 0], sizes = [16, 128], strides = [1, 1]} : vector<32x128xf32> to vector<16x128xf32>
    %c1_33 = arith.constant 1 : index
    %c8 = arith.constant 8 : index
    %51 = vector.load %arg20[%c1_33, %c8] : memref<36x144xf32, #tpu.memory_space<vmem>>, vector<16x128xf32>
    tpu.vector_store %arg20[%c1_33, %c8], %50 {strides = array<i32>} : memref<36x144xf32, #tpu.memory_space<vmem>>, vector<16x128xf32>,
    %52 = vector.extract_strided_slice %47 {offsets = [16, 0], sizes = [16, 128], strides = [1, 1]} : vector<32x128xf32> to vector<16x128xf32>
    %c19 = arith.constant 19 : index
    %c8_34 = arith.constant 8 : index
    %53 = vector.load %arg20[%c19, %c8_34] : memref<36x144xf32, #tpu.memory_space<vmem>>, vector<16x128xf32>
    tpu.vector_store %arg20[%c19, %c8_34], %52 {strides = array<i32>} : memref<36x144xf32, #tpu.memory_space<vmem>>, vector<16x128xf32>,
    %c0_35 = arith.constant 0 : index
    %c0_36 = arith.constant 0 : index
    %54 = vector.load %arg20[%c0_35, %c0_36] : memref<36x144xf32, #tpu.memory_space<vmem>>, vector<36x144xf32>
    %55 = arith.truncf %54 : vector<36x144xf32> to vector<36x144xbf16>
    %c0_37 = arith.constant 0 : index
    %c0_38 = arith.constant 0 : index
    %56 = vector.load %arg7[%c0_37, %c0_38] : memref<48x36xbf16, #tpu.memory_space<vmem>>, vector<48x36xbf16>
    %cst_39 = arith.constant dense<0.000000e+00> : vector<48x144xf32>
    %57 = tpu.matmul %56, %55, %cst_39 {dimension_numbers = #tpu.dot_dimension_numbers<[1], [0], [0], [1], [0, 0, 1, 1], [], []>} : vector<48x36xbf16>, vector<36x144xbf16>, vector<48x144xf32> -> vector<48x144xf32>
    %58 = arith.truncf %57 : vector<48x144xf32> to vector<48x144xbf16>
    %cst_40 = arith.constant 0.000000e+00 : f32
    %59 = vector.broadcast %cst_40 : f32 to vector<16x128xf32>
    %60 = vector.extract_strided_slice %58 {offsets = [0, 0], sizes = [16, 144], strides = [1, 1]} : vector<48x144xbf16> to vector<16x144xbf16>
    %c0_41 = arith.constant 0 : index
    %c0_42 = arith.constant 0 : index
    %c0_43 = arith.constant 0 : index
    %61 = vector.load %arg8[%c0_41, %c0_42, %c0_43] : memref<3x144x128xbf16, #tpu.memory_space<vmem>>, vector<1x144x128xbf16>
    %62 = vector.shape_cast %61 : vector<1x144x128xbf16> to vector<144x128xbf16>
    %cst_44 = arith.constant dense<0.000000e+00> : vector<16x128xf32>
    %63 = tpu.matmul %60, %62, %cst_44 {dimension_numbers = #tpu.dot_dimension_numbers<[1], [0], [0], [1], [0, 0, 1, 1], [], []>} : vector<16x144xbf16>, vector<144x128xbf16>, vector<16x128xf32> -> vector<16x128xf32>
    %64 = arith.addf %59, %63 : vector<16x128xf32>
    %65 = vector.extract_strided_slice %58 {offsets = [16, 0], sizes = [16, 144], strides = [1, 1]} : vector<48x144xbf16> to vector<16x144xbf16>
    %c1_45 = arith.constant 1 : index
    %c0_46 = arith.constant 0 : index
    %c0_47 = arith.constant 0 : index
    %66 = vector.load %arg8[%c1_45, %c0_46, %c0_47] : memref<3x144x128xbf16, #tpu.memory_space<vmem>>, vector<1x144x128xbf16>
    %67 = vector.shape_cast %66 : vector<1x144x128xbf16> to vector<144x128xbf16>
    %cst_48 = arith.constant dense<0.000000e+00> : vector<16x128xf32>
    %68 = tpu.matmul %65, %67, %cst_48 {dimension_numbers = #tpu.dot_dimension_numbers<[1], [0], [0], [1], [0, 0, 1, 1], [], []>} : vector<16x144xbf16>, vector<144x128xbf16>, vector<16x128xf32> -> vector<16x128xf32>
    %69 = arith.addf %64, %68 : vector<16x128xf32>
    %70 = vector.extract_strided_slice %58 {offsets = [32, 0], sizes = [16, 144], strides = [1, 1]} : vector<48x144xbf16> to vector<16x144xbf16>
    %c2_49 = arith.constant 2 : index
    %c0_50 = arith.constant 0 : index
    %c0_51 = arith.constant 0 : index
    %71 = vector.load %arg8[%c2_49, %c0_50, %c0_51] : memref<3x144x128xbf16, #tpu.memory_space<vmem>>, vector<1x144x128xbf16>
    %72 = vector.shape_cast %71 : vector<1x144x128xbf16> to vector<144x128xbf16>
    %cst_52 = arith.constant dense<0.000000e+00> : vector<16x128xf32>
    %73 = tpu.matmul %70, %72, %cst_52 {dimension_numbers = #tpu.dot_dimension_numbers<[1], [0], [0], [1], [0, 0, 1, 1], [], []>} : vector<16x144xbf16>, vector<144x128xbf16>, vector<16x128xf32> -> vector<16x128xf32>
    %74 = arith.addf %69, %73 : vector<16x128xf32>
    %cst_53 = arith.constant dense<0.000000e+00> : vector<128xf32>
    %75 = vector.multi_reduction <add>, %74, %cst_53 [0] : vector<16x128xf32> to vector<128xf32>
    %76 = vector.shape_cast %75 : vector<128xf32> to vector<1x128xf32>
    %c0_54 = arith.constant 0 : index
    %c0_55 = arith.constant 0 : index
    %77 = vector.load %arg9[%c0_54, %c0_55] : memref<128x128xf32, #tpu.memory_space<vmem>>, vector<128x128xf32>
    %cst_56 = arith.constant dense<0.000000e+00> : vector<1x128xf32>
    %78 = tpu.matmul %76, %77, %cst_56 {dimension_numbers = #tpu.dot_dimension_numbers<[1], [0], [0], [1], [0, 0, 1, 1], [], []>} : vector<1x128xf32>, vector<128x128xf32>, vector<1x128xf32> -> vector<1x128xf32>
    %cst_57 = arith.constant 7.812500e-03 : f32
    %79 = vector.broadcast %cst_57 : f32 to vector<1x128xf32>
    %80 = arith.mulf %78, %79 : vector<1x128xf32>
    %81 = vector.broadcast %80 : vector<1x128xf32> to vector<16x128xf32>
    %82 = arith.subf %74, %81 : vector<16x128xf32>
    %83 = arith.mulf %82, %82 : vector<16x128xf32>
    %cst_58 = arith.constant dense<0.000000e+00> : vector<128xf32>
    %84 = vector.multi_reduction <add>, %83, %cst_58 [0] : vector<16x128xf32> to vector<128xf32>
    %85 = vector.shape_cast %84 : vector<128xf32> to vector<1x128xf32>
    %c0_59 = arith.constant 0 : index
    %c0_60 = arith.constant 0 : index
    %86 = vector.load %arg9[%c0_59, %c0_60] : memref<128x128xf32, #tpu.memory_space<vmem>>, vector<128x128xf32>
    %cst_61 = arith.constant dense<0.000000e+00> : vector<1x128xf32>
    %87 = tpu.matmul %85, %86, %cst_61 {dimension_numbers = #tpu.dot_dimension_numbers<[1], [0], [0], [1], [0, 0, 1, 1], [], []>} : vector<1x128xf32>, vector<128x128xf32>, vector<1x128xf32> -> vector<1x128xf32>
    %cst_62 = arith.constant 7.812500e-03 : f32
    %88 = vector.broadcast %cst_62 : f32 to vector<1x128xf32>
    %89 = arith.mulf %87, %88 : vector<1x128xf32>
    %cst_63 = arith.constant 9.99999974E-6 : f32
    %90 = vector.broadcast %cst_63 : f32 to vector<1x128xf32>
    %91 = arith.addf %89, %90 : vector<1x128xf32>
    %92 = math.rsqrt %91 : vector<1x128xf32>
    %93 = vector.broadcast %92 : vector<1x128xf32> to vector<16x128xf32>
    %94 = arith.mulf %82, %93 : vector<16x128xf32>
    %c0_64 = arith.constant 0 : index
    %c0_65 = arith.constant 0 : index
    %95 = vector.load %arg10[%c0_64, %c0_65] : memref<1x128xf32, #tpu.memory_space<vmem>>, vector<1x128xf32>
    %96 = vector.broadcast %95 : vector<1x128xf32> to vector<16x128xf32>
    %97 = arith.mulf %94, %96 : vector<16x128xf32>
    %c0_66 = arith.constant 0 : index
    %c0_67 = arith.constant 0 : index
    %98 = vector.load %arg11[%c0_66, %c0_67] : memref<1x128xf32, #tpu.memory_space<vmem>>, vector<1x128xf32>
    %99 = vector.broadcast %98 : vector<1x128xf32> to vector<16x128xf32>
    %100 = arith.addf %97, %99 : vector<16x128xf32>
    %cst_68 = arith.constant 0.000000e+00 : f32
    %101 = vector.broadcast %cst_68 : f32 to vector<16x128xf32>
    %102 = arith.maximumf %100, %101 : vector<16x128xf32>
    %cst_69 = arith.constant 0.000000e+00 : f32
    %103 = vector.broadcast %cst_69 : f32 to vector<20x160xf32>
    %c0_70 = arith.constant 0 : index
    %c0_71 = arith.constant 0 : index
    %104 = vector.load %arg21[%c0_70, %c0_71] : memref<20x160xf32, #tpu.memory_space<vmem>>, vector<20x160xf32>
    tpu.vector_store %arg21[%c0_70, %c0_71], %103 {strides = array<i32>} : memref<20x160xf32, #tpu.memory_space<vmem>>, vector<20x160xf32>,
    %105 = vector.extract_strided_slice %102 {offsets = [0, 0], sizes = [8, 128], strides = [1, 1]} : vector<16x128xf32> to vector<8x128xf32>
    %c1_72 = arith.constant 1 : index
    %c16 = arith.constant 16 : index
    %106 = vector.load %arg21[%c1_72, %c16] : memref<20x160xf32, #tpu.memory_space<vmem>>, vector<8x128xf32>
    tpu.vector_store %arg21[%c1_72, %c16], %105 {strides = array<i32>} : memref<20x160xf32, #tpu.memory_space<vmem>>, vector<8x128xf32>,
    %107 = vector.extract_strided_slice %102 {offsets = [8, 0], sizes = [8, 128], strides = [1, 1]} : vector<16x128xf32> to vector<8x128xf32>
    %c11 = arith.constant 11 : index
    %c16_73 = arith.constant 16 : index
    %108 = vector.load %arg21[%c11, %c16_73] : memref<20x160xf32, #tpu.memory_space<vmem>>, vector<8x128xf32>
    tpu.vector_store %arg21[%c11, %c16_73], %107 {strides = array<i32>} : memref<20x160xf32, #tpu.memory_space<vmem>>, vector<8x128xf32>,
    %c0_74 = arith.constant 0 : index
    %c0_75 = arith.constant 0 : index
    %109 = vector.load %arg21[%c0_74, %c0_75] : memref<20x160xf32, #tpu.memory_space<vmem>>, vector<20x160xf32>
    %110 = arith.truncf %109 : vector<20x160xf32> to vector<20x160xbf16>
    %c0_76 = arith.constant 0 : index
    %c0_77 = arith.constant 0 : index
    %111 = vector.load %arg12[%c0_76, %c0_77] : memref<24x20xbf16, #tpu.memory_space<vmem>>, vector<24x20xbf16>
    %cst_78 = arith.constant dense<0.000000e+00> : vector<24x160xf32>
    %112 = tpu.matmul %111, %110, %cst_78 {dimension_numbers = #tpu.dot_dimension_numbers<[1], [0], [0], [1], [0, 0, 1, 1], [], []>} : vector<24x20xbf16>, vector<20x160xbf16>, vector<24x160xf32> -> vector<24x160xf32>
    %113 = arith.truncf %112 : vector<24x160xf32> to vector<24x160xbf16>
    %cst_79 = arith.constant 0.000000e+00 : f32
    %114 = vector.broadcast %cst_79 : f32 to vector<8x128xf32>
    %115 = vector.extract_strided_slice %113 {offsets = [0, 0], sizes = [8, 160], strides = [1, 1]} : vector<24x160xbf16> to vector<8x160xbf16>
    %c0_80 = arith.constant 0 : index
    %c0_81 = arith.constant 0 : index
    %c0_82 = arith.constant 0 : index
    %116 = vector.load %arg13[%c0_80, %c0_81, %c0_82] : memref<3x160x128xbf16, #tpu.memory_space<vmem>>, vector<1x160x128xbf16>
    %117 = vector.shape_cast %116 : vector<1x160x128xbf16> to vector<160x128xbf16>
    %cst_83 = arith.constant dense<0.000000e+00> : vector<8x128xf32>
    %118 = tpu.matmul %115, %117, %cst_83 {dimension_numbers = #tpu.dot_dimension_numbers<[1], [0], [0], [1], [0, 0, 1, 1], [], []>} : vector<8x160xbf16>, vector<160x128xbf16>, vector<8x128xf32> -> vector<8x128xf32>
    %119 = arith.addf %114, %118 : vector<8x128xf32>
    %120 = vector.extract_strided_slice %113 {offsets = [8, 0], sizes = [8, 160], strides = [1, 1]} : vector<24x160xbf16> to vector<8x160xbf16>
    %c1_84 = arith.constant 1 : index
    %c0_85 = arith.constant 0 : index
    %c0_86 = arith.constant 0 : index
    %121 = vector.load %arg13[%c1_84, %c0_85, %c0_86] : memref<3x160x128xbf16, #tpu.memory_space<vmem>>, vector<1x160x128xbf16>
    %122 = vector.shape_cast %121 : vector<1x160x128xbf16> to vector<160x128xbf16>
    %cst_87 = arith.constant dense<0.000000e+00> : vector<8x128xf32>
    %123 = tpu.matmul %120, %122, %cst_87 {dimension_numbers = #tpu.dot_dimension_numbers<[1], [0], [0], [1], [0, 0, 1, 1], [], []>} : vector<8x160xbf16>, vector<160x128xbf16>, vector<8x128xf32> -> vector<8x128xf32>
    %124 = arith.addf %119, %123 : vector<8x128xf32>
    %125 = vector.extract_strided_slice %113 {offsets = [16, 0], sizes = [8, 160], strides = [1, 1]} : vector<24x160xbf16> to vector<8x160xbf16>
    %c2_88 = arith.constant 2 : index
    %c0_89 = arith.constant 0 : index
    %c0_90 = arith.constant 0 : index
    %126 = vector.load %arg13[%c2_88, %c0_89, %c0_90] : memref<3x160x128xbf16, #tpu.memory_space<vmem>>, vector<1x160x128xbf16>
    %127 = vector.shape_cast %126 : vector<1x160x128xbf16> to vector<160x128xbf16>
    %cst_91 = arith.constant dense<0.000000e+00> : vector<8x128xf32>
    %128 = tpu.matmul %125, %127, %cst_91 {dimension_numbers = #tpu.dot_dimension_numbers<[1], [0], [0], [1], [0, 0, 1, 1], [], []>} : vector<8x160xbf16>, vector<160x128xbf16>, vector<8x128xf32> -> vector<8x128xf32>
    %129 = arith.addf %124, %128 : vector<8x128xf32>
    %cst_92 = arith.constant dense<0.000000e+00> : vector<128xf32>
    %130 = vector.multi_reduction <add>, %129, %cst_92 [0] : vector<8x128xf32> to vector<128xf32>
    %131 = vector.shape_cast %130 : vector<128xf32> to vector<1x128xf32>
    %c0_93 = arith.constant 0 : index
    %c0_94 = arith.constant 0 : index
    %132 = vector.load %arg14[%c0_93, %c0_94] : memref<128x128xf32, #tpu.memory_space<vmem>>, vector<128x128xf32>
    %cst_95 = arith.constant dense<0.000000e+00> : vector<1x128xf32>
    %133 = tpu.matmul %131, %132, %cst_95 {dimension_numbers = #tpu.dot_dimension_numbers<[1], [0], [0], [1], [0, 0, 1, 1], [], []>} : vector<1x128xf32>, vector<128x128xf32>, vector<1x128xf32> -> vector<1x128xf32>
    %cst_96 = arith.constant 3.125000e-02 : f32
    %134 = vector.broadcast %cst_96 : f32 to vector<1x128xf32>
    %135 = arith.mulf %133, %134 : vector<1x128xf32>
    %136 = vector.broadcast %135 : vector<1x128xf32> to vector<8x128xf32>
    %137 = arith.subf %129, %136 : vector<8x128xf32>
    %138 = arith.mulf %137, %137 : vector<8x128xf32>
    %cst_97 = arith.constant dense<0.000000e+00> : vector<128xf32>
    %139 = vector.multi_reduction <add>, %138, %cst_97 [0] : vector<8x128xf32> to vector<128xf32>
    %140 = vector.shape_cast %139 : vector<128xf32> to vector<1x128xf32>
    %c0_98 = arith.constant 0 : index
    %c0_99 = arith.constant 0 : index
    %141 = vector.load %arg14[%c0_98, %c0_99] : memref<128x128xf32, #tpu.memory_space<vmem>>, vector<128x128xf32>
    %cst_100 = arith.constant dense<0.000000e+00> : vector<1x128xf32>
    %142 = tpu.matmul %140, %141, %cst_100 {dimension_numbers = #tpu.dot_dimension_numbers<[1], [0], [0], [1], [0, 0, 1, 1], [], []>} : vector<1x128xf32>, vector<128x128xf32>, vector<1x128xf32> -> vector<1x128xf32>
    %cst_101 = arith.constant 3.125000e-02 : f32
    %143 = vector.broadcast %cst_101 : f32 to vector<1x128xf32>
    %144 = arith.mulf %142, %143 : vector<1x128xf32>
    %cst_102 = arith.constant 9.99999974E-6 : f32
    %145 = vector.broadcast %cst_102 : f32 to vector<1x128xf32>
    %146 = arith.addf %144, %145 : vector<1x128xf32>
    %147 = math.rsqrt %146 : vector<1x128xf32>
    %148 = vector.broadcast %147 : vector<1x128xf32> to vector<8x128xf32>
    %149 = arith.mulf %137, %148 : vector<8x128xf32>
    %c0_103 = arith.constant 0 : index
    %c0_104 = arith.constant 0 : index
    %150 = vector.load %arg15[%c0_103, %c0_104] : memref<1x128xf32, #tpu.memory_space<vmem>>, vector<1x128xf32>
    %151 = vector.broadcast %150 : vector<1x128xf32> to vector<8x128xf32>
    %152 = arith.mulf %149, %151 : vector<8x128xf32>
    %c0_105 = arith.constant 0 : index
    %c0_106 = arith.constant 0 : index
    %153 = vector.load %arg16[%c0_105, %c0_106] : memref<1x128xf32, #tpu.memory_space<vmem>>, vector<1x128xf32>
    %154 = vector.broadcast %153 : vector<1x128xf32> to vector<8x128xf32>
    %155 = arith.addf %152, %154 : vector<8x128xf32>
    %cst_107 = arith.constant 0.000000e+00 : f32
    %156 = vector.broadcast %cst_107 : f32 to vector<8x128xf32>
    %157 = arith.maximumf %155, %156 : vector<8x128xf32>
    %c0_108 = arith.constant 0 : index
    %c0_109 = arith.constant 0 : index
    %158 = vector.load %arg17[%c0_108, %c0_109] : memref<8x128xf32, #tpu.memory_space<vmem>>, vector<8x128xf32>
    %159 = arith.mulf %157, %158 : vector<8x128xf32>
    %cst_110 = arith.constant dense<0.000000e+00> : vector<8xf32>
    %160 = vector.multi_reduction <add>, %159, %cst_110 [1] : vector<8x128xf32> to vector<8xf32>
    %161 = vector.shape_cast %160 : vector<8xf32> to vector<8x1xf32>
    %c0_111 = arith.constant 0 : index
    %c0_112 = arith.constant 0 : index
    %162 = vector.load %arg18[%c0_111, %c0_112] : memref<2x8xf32, #tpu.memory_space<vmem>>, vector<2x8xf32>
    %cst_113 = arith.constant dense<0.000000e+00> : vector<2x1xf32>
    %163 = tpu.matmul %162, %161, %cst_113 {dimension_numbers = #tpu.dot_dimension_numbers<[1], [0], [0], [1], [0, 0, 1, 1], [], []>} : vector<2x8xf32>, vector<8x1xf32>, vector<2x1xf32> -> vector<2x1xf32>
    %164 = arith.negf %163 : vector<2x1xf32>
    %165 = math.exp %164 : vector<2x1xf32>
    %cst_114 = arith.constant 1.000000e+00 : f32
    %166 = vector.broadcast %cst_114 : f32 to vector<2x1xf32>
    %167 = arith.addf %166, %165 : vector<2x1xf32>
    %168 = arith.divf %166, %167 : vector<2x1xf32>
    %c0_115 = arith.constant 0 : index
    %c0_116 = arith.constant 0 : index
    %169 = vector.load %arg19[%c0_115, %c0_116] : memref<2x1xf32, #tpu.memory_space<vmem>>, vector<2x1xf32>
    tpu.vector_store %arg19[%c0_115, %c0_116], %168 {strides = array<i32>} : memref<2x1xf32, #tpu.memory_space<vmem>>, vector<2x1xf32>,
    return
  }
  func.func @transform_0(%arg0: i32) -> (i32, i32) {
    %c0_i32 = arith.constant 0 : i32
    %c0_i32_0 = arith.constant 0 : i32
    %c0_i32_1 = arith.constant 0 : i32
    return %c0_i32, %c0_i32_0 : i32, i32
  }
  func.func @transform_1(%arg0: i32) -> (i32, i32) {
    %c0_i32 = arith.constant 0 : i32
    %c0_i32_0 = arith.constant 0 : i32
    %c0_i32_1 = arith.constant 0 : i32
    return %c0_i32, %c0_i32_0 : i32, i32
  }
  func.func @transform_2(%arg0: i32) -> (i32, i32, i32) {
    %c0_i32 = arith.constant 0 : i32
    %c0_i32_0 = arith.constant 0 : i32
    %c0_i32_1 = arith.constant 0 : i32
    %c0_i32_2 = arith.constant 0 : i32
    return %c0_i32, %c0_i32_0, %c0_i32_1 : i32, i32, i32
  }
  func.func @transform_3(%arg0: i32) -> (i32, i32) {
    %c0_i32 = arith.constant 0 : i32
    %c0_i32_0 = arith.constant 0 : i32
    %c0_i32_1 = arith.constant 0 : i32
    return %c0_i32, %c0_i32_0 : i32, i32
  }
  func.func @transform_4(%arg0: i32) -> (i32, i32) {
    %c0_i32 = arith.constant 0 : i32
    %c0_i32_0 = arith.constant 0 : i32
    %c0_i32_1 = arith.constant 0 : i32
    return %c0_i32, %c0_i32_0 : i32, i32
  }
  func.func @transform_5(%arg0: i32) -> (i32, i32) {
    %c0_i32 = arith.constant 0 : i32
    %c0_i32_0 = arith.constant 0 : i32
    %c0_i32_1 = arith.constant 0 : i32
    return %c0_i32, %c0_i32_0 : i32, i32
  }
  func.func @transform_6(%arg0: i32) -> (i32, i32) {
    %c0_i32 = arith.constant 0 : i32
    %c0_i32_0 = arith.constant 0 : i32
    %c0_i32_1 = arith.constant 0 : i32
    return %c0_i32, %c0_i32_0 : i32, i32
  }
  func.func @transform_7(%arg0: i32) -> (i32, i32, i32) {
    %c0_i32 = arith.constant 0 : i32
    %c0_i32_0 = arith.constant 0 : i32
    %c0_i32_1 = arith.constant 0 : i32
    %c0_i32_2 = arith.constant 0 : i32
    return %c0_i32, %c0_i32_0, %c0_i32_1 : i32, i32, i32
  }
  func.func @transform_8(%arg0: i32) -> (i32, i32) {
    %c0_i32 = arith.constant 0 : i32
    %c0_i32_0 = arith.constant 0 : i32
    %c0_i32_1 = arith.constant 0 : i32
    return %c0_i32, %c0_i32_0 : i32, i32
  }
  func.func @transform_9(%arg0: i32) -> (i32, i32) {
    %c0_i32 = arith.constant 0 : i32
    %c0_i32_0 = arith.constant 0 : i32
    %c0_i32_1 = arith.constant 0 : i32
    return %c0_i32, %c0_i32_0 : i32, i32
  }
  func.func @transform_10(%arg0: i32) -> (i32, i32) {
    %c0_i32 = arith.constant 0 : i32
    %c0_i32_0 = arith.constant 0 : i32
    %c0_i32_1 = arith.constant 0 : i32
    return %c0_i32, %c0_i32_0 : i32, i32
  }
  func.func @transform_11(%arg0: i32) -> (i32, i32) {
    %c0_i32 = arith.constant 0 : i32
    %c0_i32_0 = arith.constant 0 : i32
    %c0_i32_1 = arith.constant 0 : i32
    return %c0_i32, %c0_i32_0 : i32, i32
  }
  func.func @transform_12(%arg0: i32) -> (i32, i32, i32) {
    %c0_i32 = arith.constant 0 : i32
    %c0_i32_0 = arith.constant 0 : i32
    %c0_i32_1 = arith.constant 0 : i32
    %c0_i32_2 = arith.constant 0 : i32
    return %c0_i32, %c0_i32_0, %c0_i32_1 : i32, i32, i32
  }
  func.func @transform_13(%arg0: i32) -> (i32, i32) {
    %c0_i32 = arith.constant 0 : i32
    %c0_i32_0 = arith.constant 0 : i32
    %c0_i32_1 = arith.constant 0 : i32
    return %c0_i32, %c0_i32_0 : i32, i32
  }
  func.func @transform_14(%arg0: i32) -> (i32, i32) {
    %c0_i32 = arith.constant 0 : i32
    %c0_i32_0 = arith.constant 0 : i32
    %c0_i32_1 = arith.constant 0 : i32
    return %c0_i32, %c0_i32_0 : i32, i32
  }
  func.func @transform_15(%arg0: i32) -> (i32, i32) {
    %c0_i32 = arith.constant 0 : i32
    %c0_i32_0 = arith.constant 0 : i32
    %c0_i32_1 = arith.constant 0 : i32
    return %c0_i32, %c0_i32_0 : i32, i32
  }
  func.func @transform_16(%arg0: i32) -> (i32, i32) {
    %c0_i32 = arith.constant 0 : i32
    %c0_i32_0 = arith.constant 0 : i32
    %c0_i32_1 = arith.constant 0 : i32
    return %c0_i32, %c0_i32_0 : i32, i32
  }
  func.func @transform_17(%arg0: i32) -> (i32, i32) {
    %c0_i32 = arith.constant 0 : i32
    %c0_i32_0 = arith.constant 0 : i32
    %c0_i32_1 = arith.constant 0 : i32
    return %c0_i32, %c0_i32_0 : i32, i32
  }
  func.func @transform_18(%arg0: i32) -> (i32, i32) {
    %c0_i32 = arith.constant 0 : i32
    %c0_i32_0 = arith.constant 0 : i32
    %c0_i32_1 = arith.constant 0 : i32
    return %c0_i32, %c0_i32_0 : i32, i32
  }
}

</mosaic_0001>

<bundles_post_ra>
// kernel: tile.41
= control target key start
LH: loop header
LB: loop body
LE: loop exit
PB: predicated region body
PF: predicated region fallthrough
CT: control target
= control target key end

     0   :  { %s28_s0 = inlined_call_operand.vmem [shape: f32[8], index: 0, kind: input, shape index: {}]   ;;  %s29_s1 = inlined_call_operand.vmem [shape: f32[16,8], index: 1, kind: output, shape index: {}]  }
   0x1   :  { %v4_v0 = vld [vmem:[%s28_s0] ss:$0 sm:$0xff] }
   0x2   :  { %5 = vst [vmem:[%s29_s1] sm:$0xff] %v4_v0  ;;  %8 = vst [vmem:[%s29_s1 + $0x8] sm:$0xff] %v4_v0 }

// kernel: tile.42
= control target key start
LH: loop header
LB: loop body
LE: loop exit
PB: predicated region body
PF: predicated region fallthrough
CT: control target
= control target key end

     0   :  { %s131_s10 = smov 120   ;;  %s132_s11 = smov 104   ;;  %vm3_vm0 = vcmask 64512   ;;  %vm9_vm1 = vcmask 1048512   ;;  %vm15_vm2 = vcmask 982912   ;;  %vm21_vm3 = vcmask 917312   ;;  %s207_s0 = inlined_call_operand.vmem [shape: f32[16,8], index: 0, kind: input, shape index: {}]   ;;  %s208_s1 = inlined_call_operand.vmem [shape: f32[1,128], index: 1, kind: output, shape index: {}]  }
   0x1   :  { %v101_v0 = vld [vmem:[%s207_s0 + $0xf] sm:$0x1]   ;;  %v103_v1 = vld [vmem:[%s207_s0 + $0xd] sm:$0x1]   ;;  %v102_v2 = vld [vmem:[%s207_s0 + $0xe] sm:$0x1]  }
   0x2   :  { %7 = vrot.lane.b32.xlu0 %v101_v0, %s131_s10  ;;  %19 = vrot.lane.b32.xlu1 %v103_v1, %s132_s11  ;;  %v104_v3 = vld [vmem:[%s207_s0 + $0xc] sm:$0x1]   ;;  %s133_s16 = smov 112   ;;  %s134_s17 = smov 96   ;;  %v105_v4 = vld [vmem:[%s207_s0 + $0xb] sm:$0x1]  }
   0x3   :  { %v106_v5 = vld [vmem:[%s207_s0 + $0xa] sm:$0x1]   ;;  %v2_v6 = vld [vmem:[%s207_s0] sm:$0x1]   ;;  %s135_s24 = smov 88   ;;  %s136_s25 = smov 80  }
   0x4   :  { %4 = vst.msk [vmem:[#allocation0] sm:$0x1] %vm3_vm0, %v2_v6   ;;  %v107_v7 = vld [vmem:[%s207_s0 + $0x9] sm:$0x1]   ;;  %v108_v8 = vld [vmem:[%s207_s0 + $0x8] sm:$0x1]  }
   0x5   :  { %s137_s30 = smov 72   ;;  %s138_s2 = smov 64   ;;  %v109_v9 = vld [vmem:[%s207_s0 + $0x7] sm:$0x1]   ;;  %v110_v10 = vld [vmem:[%s207_s0 + $0x6] sm:$0x1]  }
   0x6   :  { %13 = vrot.lane.b32.xlu0 %v102_v2, %s133_s16  ;;  %25 = vrot.lane.b32.xlu1 %v104_v3, %s134_s17  ;;  %s139_s7 = smov 56   ;;  %s140_s8 = smov 48   ;;  %v111_v11 = vld [vmem:[%s207_s0 + $0x5] sm:$0x1]   ;;  %v112_v12 = vld [vmem:[%s207_s0 + $0x4] sm:$0x1]  }
   0x7   :  { %s141_s13 = smov 40   ;;  %s142_s14 = smov 32   ;;  %v113_v13 = vld [vmem:[%s207_s0 + $0x3] sm:$0x1]   ;;  %v114_v14 = vld [vmem:[%s207_s0 + $0x2] sm:$0x1]  }
   0x8   :  { %s143_s19 = smov 24   ;;  %s144_s20 = smov 16   ;;  %v115_v15 = vld [vmem:[%s207_s0 + $0x1] sm:$0x1]   ;;  %vm27_vm4 = vcmask 851712   ;;  %vm33_vm5 = vcmask 786112  }
   0x9   :  { %s145_s0 = smov 8   ;;  %vm39_vm6 = vcmask 720512   ;;  %vm45_vm7 = vcmask 654912   ;;  %vm51_vm8 = vcmask 589312   ;;  %vm57_vm9 = vcmask 523712  }
   0xa   :  { %31 = vrot.lane.b32.xlu0 %v105_v4, %s135_s24  ;;  %37 = vrot.lane.b32.xlu1 %v106_v5, %s136_s25  ;;  %vm63_vm10 = vcmask 458112   ;;  %vm69_vm11 = vcmask 392512   ;;  %vm75_vm12 = vcmask 326912   ;;  %vm81_vm13 = vcmask 261312  }
   0xb   :  { %vm87_vm14 = vcmask 195712   ;;  %vm93_vm15 = vcmask 130112  }
   0xe   :  { %43 = vrot.lane.b32.xlu0 %v107_v7, %s137_s30  ;;  %49 = vrot.lane.b32.xlu1 %v108_v8, %s138_s2 }
  0x12   :  { %55 = vrot.lane.b32.xlu0 %v109_v9, %s139_s7  ;;  %61 = vrot.lane.b32.xlu1 %v110_v10, %s140_s8 }
  0x16   :  { %67 = vrot.lane.b32.xlu0 %v111_v11, %s141_s13  ;;  %73 = vrot.lane.b32.xlu1 %v112_v12, %s142_s14 }
  0x1a   :  { %79 = vrot.lane.b32.xlu0 %v113_v13, %s143_s19  ;;  %85 = vrot.lane.b32.xlu1 %v114_v14, %s144_s20 }
  0x1e   :  { %91 = vrot.lane.b32.xlu0 %v115_v15, %s145_s0 }
  0x74   :  { %v8_v16 = vpop.permute.xlu0 %7   ;;  %v20_v17 = vpop.permute.xlu1 %19  }
  0x75   :  { %10 = vst.msk [vmem:[#allocation0] sm:$0x1] %vm9_vm1, %v8_v16  }
  0x78   :  { %v14_v18 = vpop.permute.xlu0 %13   ;;  %v26_v19 = vpop.permute.xlu1 %25  }
  0x79   :  { %16 = vst.msk [vmem:[#allocation0] sm:$0x1] %vm15_vm2, %v14_v18  }
  0x7a   :  { %22 = vst.msk [vmem:[#allocation0] sm:$0x1] %vm21_vm3, %v20_v17  }
  0x7b   :  { %28 = vst.msk [vmem:[#allocation0] sm:$0x1] %vm27_vm4, %v26_v19  }
  0x7c   :  { %v32_v20 = vpop.permute.xlu0 %31   ;;  %v38_v21 = vpop.permute.xlu1 %37  }
  0x7d   :  { %34 = vst.msk [vmem:[#allocation0] sm:$0x1] %vm33_vm5, %v32_v20  }
  0x7e   :  { %40 = vst.msk [vmem:[#allocation0] sm:$0x1] %vm39_vm6, %v38_v21  }
  0x80   :  { %v44_v22 = vpop.permute.xlu0 %43   ;;  %v50_v23 = vpop.permute.xlu1 %49  }
  0x81   :  { %46 = vst.msk [vmem:[#allocation0] sm:$0x1] %vm45_vm7, %v44_v22  }
  0x82   :  { %52 = vst.msk [vmem:[#allocation0] sm:$0x1] %vm51_vm8, %v50_v23  }
  0x84   :  { %v56_v24 = vpop.permute.xlu0 %55   ;;  %v62_v25 = vpop.permute.xlu1 %61  }
  0x85   :  { %58 = vst.msk [vmem:[#allocation0] sm:$0x1] %vm57_vm9, %v56_v24  }
  0x86   :  { %64 = vst.msk [vmem:[#allocation0] sm:$0x1] %vm63_vm10, %v62_v25  }
  0x88   :  { %v68_v26 = vpop.permute.xlu0 %67   ;;  %v74_v27 = vpop.permute.xlu1 %73  }
  0x89   :  { %70 = vst.msk [vmem:[#allocation0] sm:$0x1] %vm69_vm11, %v68_v26  }
  0x8a   :  { %76 = vst.msk [vmem:[#allocation0] sm:$0x1] %vm75_vm12, %v74_v27  }
  0x8c   :  { %v80_v28 = vpop.permute.xlu0 %79   ;;  %v86_v29 = vpop.permute.xlu1 %85  }
  0x8d   :  { %82 = vst.msk [vmem:[#allocation0] sm:$0x1] %vm81_vm13, %v80_v28  }
  0x8e   :  { %88 = vst.msk [vmem:[#allocation0] sm:$0x1] %vm87_vm14, %v86_v29  }
  0x90   :  { %v92_v30 = vpop.permute.xlu0 %91  }
  0x91   :  { %94 = vst.msk [vmem:[#allocation0] sm:$0x1] %vm93_vm15, %v92_v30  }
  0x98   :  { %v98_v31 = vld [vmem:[#allocation0] sm:$0x1] }
  0x99   :  { %100 = vst [vmem:[%s208_s1] sm:$0x1] %v98_v31 }

// kernel: tile.51
= control target key start
LH: loop header
LB: loop body
LE: loop exit
PB: predicated region body
PF: predicated region fallthrough
CT: control target
= control target key end

     0   :  { %s22_s0 = inlined_call_operand.vmem [shape: f32[16], index: 0, kind: input, shape index: {}]   ;;  %s23_s1 = inlined_call_operand.vmem [shape: f32[8,16], index: 1, kind: output, shape index: {}]  }
   0x1   :  { %v4_v0 = vld [vmem:[%s22_s0] ss:$0 sm:$0xff] }
   0x2   :  { %5 = vst [vmem:[%s23_s1] sm:$0xff] %v4_v0 }

// kernel: tile.52
= control target key start
LH: loop header
LB: loop body
LE: loop exit
PB: predicated region body
PF: predicated region fallthrough
CT: control target
= control target key end

     0   :  { %s67_s10 = smov 112   ;;  %s68_s11 = smov 80   ;;  %vm3_vm0 = vcmask 130048   ;;  %vm9_vm1 = vcmask 1048448   ;;  %vm15_vm2 = vcmask 917248   ;;  %vm21_vm3 = vcmask 786048   ;;  %s111_s0 = inlined_call_operand.vmem [shape: f32[8,16], index: 0, kind: input, shape index: {}]   ;;  %s112_s1 = inlined_call_operand.vmem [shape: f32[1,128], index: 1, kind: output, shape index: {}]  }
   0x1   :  { %v53_v0 = vld [vmem:[%s111_s0 + $0x7] sm:$0x1]   ;;  %v55_v1 = vld [vmem:[%s111_s0 + $0x5] sm:$0x1]   ;;  %v54_v2 = vld [vmem:[%s111_s0 + $0x6] sm:$0x1]  }
   0x2   :  { %7 = vrot.lane.b32.xlu0 %v53_v0, %s67_s10  ;;  %19 = vrot.lane.b32.xlu1 %v55_v1, %s68_s11  ;;  %v56_v3 = vld [vmem:[%s111_s0 + $0x4] sm:$0x1]   ;;  %v2_v4 = vld [vmem:[%s111_s0] sm:$0x1]   ;;  %s69_s18 = smov 96   ;;  %s70_s19 = smov 64  }
   0x3   :  { %4 = vst.msk [vmem:[#allocation0] sm:$0x1] %vm3_vm0, %v2_v4   ;;  %v57_v5 = vld [vmem:[%s111_s0 + $0x3] sm:$0x1]   ;;  %v58_v6 = vld [vmem:[%s111_s0 + $0x2] sm:$0x1]  }
   0x4   :  { %s71_s24 = smov 48   ;;  %s72_s25 = smov 32   ;;  %v59_v7 = vld [vmem:[%s111_s0 + $0x1] sm:$0x1]   ;;  %vm27_vm4 = vcmask 654848   ;;  %vm33_vm5 = vcmask 523648  }
   0x5   :  { %s73_s0 = smov 16   ;;  %vm39_vm6 = vcmask 392448   ;;  %vm45_vm7 = vcmask 261248  }
   0x6   :  { %13 = vrot.lane.b32.xlu0 %v54_v2, %s69_s18  ;;  %25 = vrot.lane.b32.xlu1 %v56_v3, %s70_s19 }
   0xa   :  { %31 = vrot.lane.b32.xlu0 %v57_v5, %s71_s24  ;;  %37 = vrot.lane.b32.xlu1 %v58_v6, %s72_s25 }
   0xe   :  { %43 = vrot.lane.b32.xlu0 %v59_v7, %s73_s0 }
  0x74   :  { %v8_v8 = vpop.permute.xlu0 %7   ;;  %v20_v9 = vpop.permute.xlu1 %19  }
  0x75   :  { %10 = vst.msk [vmem:[#allocation0] sm:$0x1] %vm9_vm1, %v8_v8  }
  0x78   :  { %v14_v10 = vpop.permute.xlu0 %13   ;;  %v26_v11 = vpop.permute.xlu1 %25  }
  0x79   :  { %16 = vst.msk [vmem:[#allocation0] sm:$0x1] %vm15_vm2, %v14_v10  }
  0x7a   :  { %22 = vst.msk [vmem:[#allocation0] sm:$0x1] %vm21_vm3, %v20_v9  }
  0x7b   :  { %28 = vst.msk [vmem:[#allocation0] sm:$0x1] %vm27_vm4, %v26_v11  }
  0x7c   :  { %v32_v12 = vpop.permute.xlu0 %31   ;;  %v38_v13 = vpop.permute.xlu1 %37  }
  0x7d   :  { %34 = vst.msk [vmem:[#allocation0] sm:$0x1] %vm33_vm5, %v32_v12  }
  0x7e   :  { %40 = vst.msk [vmem:[#allocation0] sm:$0x1] %vm39_vm6, %v38_v13  }
  0x80   :  { %v44_v14 = vpop.permute.xlu0 %43  }
  0x81   :  { %46 = vst.msk [vmem:[#allocation0] sm:$0x1] %vm45_vm7, %v44_v14  }
  0x88   :  { %v50_v15 = vld [vmem:[#allocation0] sm:$0x1] }
  0x89   :  { %52 = vst [vmem:[%s112_s1] sm:$0x1] %v50_v15 }

// kernel: tile.61
= control target key start
LH: loop header
LB: loop body
LE: loop exit
PB: predicated region body
PF: predicated region fallthrough
CT: control target
= control target key end

     0   :  { %s22_s0 = inlined_call_operand.vmem [shape: f32[32], index: 0, kind: input, shape index: {}]   ;;  %s23_s1 = inlined_call_operand.vmem [shape: f32[4,32], index: 1, kind: output, shape index: {}]  }
   0x1   :  { %v4_v0 = vld [vmem:[%s22_s0] ss:$0 sm:$0xff] }
   0x2   :  { %5 = vst [vmem:[%s23_s1] sm:$0xf] %v4_v0 }

// kernel: tile.62
= control target key start
LH: loop header
LB: loop body
LE: loop exit
PB: predicated region body
PF: predicated region fallthrough
CT: control target
= control target key end

     0   :  { %vm7_vm0 = vcmask 261120   ;;  %s37_s8 = smov 32   ;;  %s38_s9 = smov 64   ;;  %vm13_vm1 = vcmask 1048320   ;;  %vm19_vm2 = vcmask 785920   ;;  %vm25_vm3 = vcmask 523520   ;;  %s55_s0 = inlined_call_operand.vmem [shape: f32[4,32], index: 0, kind: input, shape index: {}]   ;;  %s56_s1 = inlined_call_operand.vmem [shape: f32[1,128], index: 1, kind: output, shape index: {}]  }
   0x1   :  { %v4_v0 = vld [vmem:[%s55_s0] sm:$0xf]  ;;  %s36_s0 = smov 96  }
   0x2   :  { %5 = vst [vmem:[#allocation1] sm:$0xf] %v4_v0 }
   0x9   :  { %v10_v1 = vld [vmem:[#allocation1 + $0x3] sm:$0x1]   ;;  %v22_v2 = vld [vmem:[#allocation1 + $0x1] sm:$0x1]   ;;  %v6_v3 = vld [vmem:[#allocation1] sm:$0x1]  }
   0xa   :  { %11 = vrot.lane.b32.xlu0 %v10_v1, %s36_s0  ;;  %23 = vrot.lane.b32.xlu1 %v22_v2, %s37_s8  ;;  %v16_v4 = vld [vmem:[#allocation1 + $0x2] sm:$0x1]   ;;  %8 = vst.msk [vmem:[#allocation0] sm:$0x1] %vm7_vm0, %v6_v3  }
   0xe   :  { %17 = vrot.lane.b32.xlu0 %v16_v4, %s38_s9 }
  0x7c   :  { %v12_v5 = vpop.permute.xlu0 %11   ;;  %v24_v6 = vpop.permute.xlu1 %23  }
  0x7d   :  { %14 = vst.msk [vmem:[#allocation0] sm:$0x1] %vm13_vm1, %v12_v5  }
  0x80   :  { %v18_v7 = vpop.permute.xlu0 %17  }
  0x81   :  { %20 = vst.msk [vmem:[#allocation0] sm:$0x1] %vm19_vm2, %v18_v7  }
  0x82   :  { %26 = vst.msk [vmem:[#allocation0] sm:$0x1] %vm25_vm3, %v24_v6  }
  0x89   :  { %v30_v8 = vld [vmem:[#allocation0] sm:$0x1] }
  0x8a   :  { %32 = vst [vmem:[%s56_s1] sm:$0x1] %v30_v8 }

// kernel: dc_discriminator_forward.1
= control target key start
LH: loop header
LB: loop body
LE: loop exit
PB: predicated region body
PF: predicated region fallthrough
CT: control target
= control target key end

     0   :  { %vm138_vm0 = vcmask 556032   ;;  %vm157_vm1 = vcmask 1041408   ;;  %v3309_v21 = vmov 0.0|0.0   ;;  %vm3310_vm2 = vmmov 0   ;;  %s4103_s0 = inlined_call_operand.vmem [shape: bf16[68,128], index: 0, kind: input, shape index: {}]   ;;  %s4104_s1 = inlined_call_operand.vmem [shape: bf16[96,68], index: 1, kind: input, shape index: {}]   ;;  %s4105_s2 = inlined_call_operand.vmem [shape: bf16[3,128,128], index: 2, kind: input, shape index: {}]   ;;  %s4106_s3 = inlined_call_operand.vmem [shape: f32[128,128], index: 3, kind: input, shape index: {}]   ;;  %s4107_s4 = inlined_call_operand.vmem [shape: f32[1,128], index: 4, kind: input, shape index: {}]   ;;  %s4108_s5 = inlined_call_operand.vmem [shape: f32[1,128], index: 5, kind: input, shape index: {}]   ;;  %s4109_s6 = inlined_call_operand.vmem [shape: bf16[48,36], index: 6, kind: input, shape index: {}]   ;;  %s4110_s7 = inlined_call_operand.vmem [shape: bf16[3,144,128], index: 7, kind: input, shape index: {}]   ;;  %s4111_s8 = inlined_call_operand.vmem [shape: f32[128,128], index: 8, kind: input, shape index: {}]   ;;  %s4112_s9 = inlined_call_operand.vmem [shape: f32[1,128], index: 9, kind: input, shape index: {}]   ;;  %s4113_s10 = inlined_call_operand.vmem [shape: f32[1,128], index: 10, kind: input, shape index: {}]   ;;  %s4114_s11 = inlined_call_operand.vmem [shape: bf16[24,20], index: 11, kind: input, shape index: {}]   ;;  %s4115_s12 = inlined_call_operand.vmem [shape: bf16[3,160,128], index: 12, kind: input, shape index: {}]   ;;  %s4116_s13 = inlined_call_operand.vmem [shape: f32[128,128], index: 13, kind: input, shape index: {}]   ;;  %s4117_s14 = inlined_call_operand.vmem [shape: f32[1,128], index: 14, kind: input, shape index: {}]   ;;  %s4118_s15 = inlined_call_operand.vmem [shape: f32[1,128], index: 15, kind: input, shape index: {}]   ;;  %s4119_s16 = inlined_call_operand.vmem [shape: f32[8,128], index: 16, kind: input, shape index: {}]   ;;  %s4120_s17 = inlined_call_operand.vmem [shape: f32[2,8], index: 17, kind: input, shape index: {}]   ;;  %s4121_s18 = inlined_call_operand.vmem [shape: f32[2,1], index: 18, kind: output, shape index: {}]  }
   0x1   :  { %4125 = sst [smem:[#allocation4_spill]] %s4103_s0  ;;  %v602_v22 = vld [vmem:[%s4106_s3] sm:$0xff]  ;;  %v603_v23 = vld [vmem:[%s4106_s3 + $0x8] sm:$0xff]  ;;  %v604_v24 = vld [vmem:[%s4106_s3 + $0x10] sm:$0xff]  ;;  %vm818_vm3 = vcmask 130048   ;;  %vm827_vm4 = vcmask 125952  }
   0x2   :  { %4126 = sst [smem:[#allocation5_spill]] %s4104_s1  ;;  %s4128_s29 = sld [smem:[#allocation4_spill]]  ;;  %v3488_v25 = vpack.c.bf16 %v603_v23, %v602_v22  ;;  %v605_v26 = vld [vmem:[%s4106_s3 + $0x18] sm:$0xff]  ;;  %v606_v28 = vld [vmem:[%s4106_s3 + $0x20] sm:$0xff]  ;;  %v607_v29 = vld [vmem:[%s4106_s3 + $0x28] sm:$0xff]  ;;  %vm831_vm5 = vcmask 1040384  }
   0x3   :  { %4127 = sst [smem:[#allocation6_spill]] %s4105_s2  ;;  %s4129_s22 = sld [smem:[#allocation5_spill]]  ;;  %v3494_v27 = vpack.c.bf16 %v605_v26, %v604_v24  ;;  %v3504_v30 = vpack.c.bf16 %v607_v29, %v606_v28  ;;  %vm858_vm6 = vcmask 1042432   ;;  %vm852_vm7 = vcmask 1040448  }
   0x4   :  { %s4130_s28 = sld [smem:[#allocation6_spill]]  ;;  %vm854_vm8 = vcmask 57344   ;;  %vm844_vm9 = vcmask 1047617   ;;  %vm846_vm10 = vcmask 64513   ;;  %vm871_vm11 = vcmask 1047619  }
   0x5   :  { %vm873_vm12 = vcmask 64515   ;;  %vm848_vm13 = vcmask 1047616   ;;  %vm850_vm14 = vcmask 64512   ;;  %vm877_vm15 = vcmask 1042496  }
   0x8   :  { %v3202_v0 = vld [vmem:[%s4128_s29] sm:$0xff]   ;;  %v3203_v1 = vld [vmem:[%s4128_s29 + $0x8] sm:$0xff]   ;;  %v3204_v2 = vld [vmem:[%s4128_s29 + $0x10] sm:$0xff]  }
   0x9   :  { %2730 = vmatprep.subr.bf16.mxu0 %v3202_v0  ;;  %v3207_v3 = vld [vmem:[%s4129_s22] sm:$0xff]   ;;  %v3205_v4 = vld [vmem:[%s4128_s29 + $0x18] sm:$0xff]   ;;  %v3208_v10 = vld [vmem:[%s4129_s22 + $0x8] sm:$0xff]  }
   0xa   :  { %2731 = vmatpush3.bf16.msra.mxu0 %v3202_v0  ;;  %2740 = vmatprep.mubr.msk.bf16.mxu0 %vm138_vm0, %v3207_v3  ;;  %v3206_v5 = vld [vmem:[%s4128_s29 + $0x20] ss:$0 sps:$4 sm:$0x33]   ;;  %v3214_v7 = vld [vmem:[%s4130_s28 + $0x48] sm:$0xff]   ;;  %v3215_v9 = vld [vmem:[%s4130_s28 + $0x50] sm:$0xff]  }
   0xb   :  { %2732 = vmatprep.subr.bf16.mxu0 %v3203_v1  ;;  %v3213_v6 = vld [vmem:[%s4130_s28 + $0x40] sm:$0xff]   ;;  %v159_v8 = vsel %vm157_vm1, %v3206_v5, 0  ;;  %v3209_v11 = vld [vmem:[%s4129_s22 + $0x10] sm:$0xff]   ;;  %v3216_v12 = vld [vmem:[%s4130_s28 + $0x58] sm:$0xff]  }
   0xc   :  { %2752 = vmatprep.subr.bf16.mxu1 %v3213_v6  ;;  %v3217_v13 = vld [vmem:[%s4130_s28 + $0x60] sm:$0xff]   ;;  %v3210_v14 = vld [vmem:[%s4129_s22 + $0x18] sm:$0xff]   ;;  %v3212_v16 = vld [vmem:[%s4129_s22 + $0x28] sm:$0xff]  }
   0xd   :  { %2753 = vmatpush3.bf16.msra.mxu1 %v3213_v6  ;;  %v3211_v15 = vld [vmem:[%s4129_s22 + $0x20] sm:$0xff]   ;;  %v3218_v17 = vld [vmem:[%s4130_s28 + $0x68] sm:$0xff]   ;;  %v3219_v18 = vld [vmem:[%s4130_s28 + $0x70] sm:$0xff]  }
   0xe   :  { %2733 = vmatpush3.bf16.msra.mxu0 %v3203_v1  ;;  %2754 = vmatprep.subr.bf16.mxu1 %v3214_v7  ;;  %v3220_v19 = vld [vmem:[%s4130_s28 + $0x78] sm:$0xff]   ;;  %v3221_v20 = vld [vmem:[%s4130_s28] sm:$0xff]   ;;  %v3222_v43 = vld [vmem:[%s4130_s28 + $0x8] sm:$0xff]  }
   0xf   :  { %2734 = vmatprep.subr.bf16.mxu0 %v3204_v2  ;;  %v3223_v45 = vld [vmem:[%s4130_s28 + $0x10] sm:$0xff]   ;;  %v3224_v51 = vld [vmem:[%s4130_s28 + $0x18] sm:$0xff]   ;;  %v3225_v52 = vld [vmem:[%s4130_s28 + $0x20] sm:$0xff]  }
  0x10   :  { %v3226_v53 = vld [vmem:[%s4130_s28 + $0x28] sm:$0xff]   ;;  %v3227_v54 = vld [vmem:[%s4130_s28 + $0x30] sm:$0xff]   ;;  %v3228_v55 = vld [vmem:[%s4130_s28 + $0x38] sm:$0xff]  }
  0x11   :  { %2755 = vmatpush3.bf16.msra.mxu1 %v3214_v7  ;;  %v3229_v56 = vld [vmem:[%s4130_s28 + $0x80] sm:$0xff]   ;;  %v3230_v57 = vld [vmem:[%s4130_s28 + $0x88] sm:$0xff]   ;;  %v3231_v58 = vld [vmem:[%s4130_s28 + $0x90] sm:$0xff]  }
  0x12   :  { %2735 = vmatpush3.bf16.msra.mxu0 %v3204_v2  ;;  %2756 = vmatprep.subr.bf16.mxu1 %v3215_v9  ;;  %v3232_v59 = vld [vmem:[%s4130_s28 + $0x98] sm:$0xff]   ;;  %v3233_v60 = vld [vmem:[%s4130_s28 + $0xa0] sm:$0xff]   ;;  %v3234_v61 = vld [vmem:[%s4130_s28 + $0xa8] sm:$0xff]  }
  0x13   :  { %2736 = vmatprep.subr.bf16.mxu0 %v3205_v4  ;;  %v3235_v62 = vld [vmem:[%s4130_s28 + $0xb0] sm:$0xff]   ;;  %v3236_v63 = vld [vmem:[%s4130_s28 + $0xb8] sm:$0xff]   ;;  %v610_v3 = vld [vmem:[%s4106_s3 + $0x40] sm:$0xff] }
  0x14   :  { %v608_v0 = vld [vmem:[%s4106_s3 + $0x30] sm:$0xff]  ;;  %v609_v1 = vld [vmem:[%s4106_s3 + $0x38] sm:$0xff] }
  0x15   :  { %2757 = vmatpush3.bf16.msra.mxu1 %v3215_v9  ;;  %v3037_v2 = vpack.c.bf16 %v609_v1, %v608_v0  ;;  %v612_v6 = vld [vmem:[%s4106_s3 + $0x50] sm:$0xff]  ;;  %v613_v7 = vld [vmem:[%s4106_s3 + $0x58] sm:$0xff]  ;;  %v614_v9 = vld [vmem:[%s4106_s3 + $0x60] sm:$0xff] }
  0x16   :  { %2737 = vmatpush3.bf16.msra.mxu0 %v3205_v4  ;;  %2758 = vmatprep.subr.bf16.mxu1 %v3216_v12  ;;  %v611_v4 = vld [vmem:[%s4106_s3 + $0x48] sm:$0xff]  ;;  %v2427_v1 = vld [vmem:[%s4108_s5] ss:$0 sm:$0xff] }
  0x17   :  { %3195 = vmatprep.subr.msk.bf16.mxu0 %vm157_vm1, %v3206_v5  ;;  %v3040_v5 = vpack.c.bf16 %v611_v4, %v610_v3 }
  0x19   :  { %2759 = vmatpush3.bf16.msra.mxu1 %v3216_v12  ;;  %v616_v12 = vld [vmem:[%s4106_s3 + $0x70] sm:$0xff] }
  0x1a   :  { %2739 = vmatpush3.bf16.msra.mxu0 %v159_v8  ;;  %2760 = vmatprep.subr.bf16.mxu1 %v3217_v13  ;;  %v3043_v8 = vpack.c.bf16 %v613_v7, %v612_v6 }
  0x1b   :  { %3027 = vmatprep.subr.bf16.mxu0 %v3309_v21 }
  0x1d   :  { %2741 = vmatmul.mubr.msk.bf16.vlgmr.msra.gmra.mrb[0].mxu0 %vm138_vm0, %v3208_v10  ;;  %2761 = vmatpush3.bf16.msra.mxu1 %v3217_v13  ;;  %v615_v10 = vld [vmem:[%s4106_s3 + $0x68] sm:$0xff]  ;;  %v617_v13 = vld [vmem:[%s4106_s3 + $0x78] sm:$0xff] }
  0x1e   :  { %2744 = vmatprep.mubr.msk.bf16.mxu0 %vm138_vm0, %v3209_v11  ;;  %2762 = vmatprep.subr.bf16.mxu1 %v3218_v17  ;;  %v3046_v11 = vpack.c.bf16 %v615_v10, %v614_v9 }
  0x1f   :  { %3029 = vmatpush3.bf16.msra.mxu0 %v3488_v25 }
  0x20   :  { %3030 = vmatprep.subr.bf16.mxu0 %v3309_v21 }
  0x21   :  { %2763 = vmatpush3.bf16.msra.mxu1 %v3218_v17 }
  0x22   :  { %2764 = vmatprep.subr.bf16.mxu1 %v3219_v18 }
  0x23   :  { %3032 = vmatpush3.bf16.msra.mxu0 %v3494_v27 }
  0x24   :  { %3033 = vmatprep.subr.bf16.mxu0 %v3309_v21 }
  0x25   :  { %2745 = vmatmul.mubr.msk.bf16.gmra.mrb[4].mxu0 %vm138_vm0, %v3210_v14  ;;  %2765 = vmatpush3.bf16.msra.mxu1 %v3219_v18  ;;  %v3049_v14 = vpack.c.bf16 %v617_v13, %v616_v12 }
  0x26   :  { %2748 = vmatprep.mubr.msk.bf16.mxu0 %vm138_vm0, %v3211_v15  ;;  %2766 = vmatprep.subr.bf16.mxu1 %v3220_v19  ;;  %v3311_v15 = vmov 0.0  }
  0x27   :  { %3035 = vmatpush3.bf16.msra.mxu0 %v3504_v30  ;;  %817 = vst [vmem:[#allocation2] sm:$0xff] %v3311_v15  ;;  %820 = vst [vmem:[#allocation2 + $0x10] sm:$0xff] %v3311_v15 }
  0x28   :  { %3036 = vmatprep.subr.bf16.mxu0 %v3309_v21  ;;  %822 = vst [vmem:[#allocation2 + $0x20] sm:$0xff] %v3311_v15  ;;  %824 = vst [vmem:[#allocation2 + $0x30] sm:$0xff] %v3311_v15 }
  0x29   :  { %2767 = vmatpush3.bf16.msra.mxu1 %v3220_v19  ;;  %826 = vst [vmem:[#allocation2 + $0x40] sm:$0xf] %v3311_v15  ;;  %1563 = vst [vmem:[#allocation3] sm:$0xff] %v3311_v15 }
  0x2a   :  { %2772 = vmatprep.subr.bf16.mxu1 %v3221_v20  ;;  %1566 = vst [vmem:[#allocation3 + $0x10] sm:$0xff] %v3311_v15  ;;  %1568 = vst [vmem:[#allocation3 + $0x20] sm:$0xf] %v3311_v15 }
  0x2b   :  { %3038 = vmatpush3.bf16.msra.mxu0 %v3037_v2  ;;  %823 = vst.msk [vmem:[#allocation2 + $0x28] sm:$0xff] %vm818_vm3, %v3311_v15  ;;  %819 = vst.msk [vmem:[#allocation2 + $0x8] sm:$0xff] %vm818_vm3, %v3311_v15 }
  0x2c   :  { %3039 = vmatprep.subr.bf16.mxu0 %v3309_v21  ;;  %821 = vst.msk [vmem:[#allocation2 + $0x18] sm:$0xff] %vm818_vm3, %v3311_v15  ;;  %825 = vst.msk [vmem:[#allocation2 + $0x38] sm:$0xff] %vm818_vm3, %v3311_v15 }
  0x2d   :  { %2749 = vmatmul.mubr.msk.bf16.gmra.mrb[8].mxu0 %vm138_vm0, %v3212_v16  ;;  %828 = vst.msk [vmem:[#allocation2 + $0x48] sm:$0xf] %vm827_vm4, %v3311_v15  ;;  %vm879_vm0 = vcmask 59392   ;;  %vm918_vm4 = vcmask 293888  }
  0x2e   :  { %2844 = vmatprep.mubr.msk.f32.mxu0 %vm3310_vm2, %v3311_v15 }
  0x2f   :  { %3041 = vmatpush3.bf16.msra.mxu0 %v3040_v5 }
  0x30   :  { %3042 = vmatprep.subr.bf16.mxu0 %v3309_v21 }
  0x33   :  { %3044 = vmatpush3.bf16.msra.mxu0 %v3043_v8 }
  0x34   :  { %3045 = vmatprep.subr.bf16.mxu0 %v3309_v21 }
  0x37   :  { %3047 = vmatpush3.bf16.msra.mxu0 %v3046_v11 }
  0x38   :  { %3048 = vmatprep.subr.bf16.mxu0 %v3309_v21 }
  0x3b   :  { %3050 = vmatpush3.bf16.msra.mxu0 %v3049_v14 }
  0x3c   :  { %3051 = vmatprep.subr.bf16.mxu0 %v3309_v21 }
  0xf0   :  { %v2742_v31 = vpop.f32.mrb[0].mxu0 }
  0xf1   :  { %v195_v32 = vpop.f32.mrb[1].mxu0 }
  0xf2   :  { %v2743_v33 = vpop.f32.mrb[2].mxu0 }
  0xf3   :  { %v243_v34 = vpack.c.bf16 %v2743_v33, %v2742_v31  ;;  %v198_v35 = vpop.f32.mrb[3].mxu0 }
  0xf4   :  { %v242_v36 = vpack.c.bf16 %v198_v35, %v195_v32 }
  0xf8   :  { %v2746_v37 = vpop.f32.mrb[4].mxu0 }
  0xf9   :  { %v211_v38 = vpop.f32.mrb[5].mxu0 }
  0xfa   :  { %v2747_v39 = vpop.f32.mrb[6].mxu0 }
  0xfb   :  { %v245_v40 = vpack.c.bf16 %v2747_v39, %v2746_v37  ;;  %v214_v41 = vpop.f32.mrb[7].mxu0 }
  0xfc   :  { %v244_v42 = vpack.c.bf16 %v214_v41, %v211_v38 }
  0xfe   :  { %2768 = vmatprep.mubr.bf16.mxu1 %v244_v42 }
  0xff   :  { %2769 = vmatmul.mubr.bf16.vlgmr.msra.gmra.mrb[0].mxu1 %v245_v40 }
 0x100   :  { %2773 = vmatpush3.bf16.msra.mxu1 %v3221_v20  ;;  %2788 = vmatprep.mubr.bf16.mxu1 %v242_v36  ;;  %v2750_v44 = vpop.f32.mrb[8].mxu0 }
 0x101   :  { %2774 = vmatprep.subr.bf16.mxu1 %v3222_v43  ;;  %v227_v46 = vpop.f32.mrb[9].mxu0 }
 0x102   :  { %v2751_v47 = vpop.f32.mrb[10].mxu0 }
 0x103   :  { %v247_v48 = vpack.c.bf16 %v2751_v47, %v2750_v44  ;;  %v230_v49 = vpop.f32.mrb[11].mxu0 }
 0x104   :  { %2775 = vmatpush3.bf16.msra.mxu1 %v3222_v43  ;;  %v246_v50 = vpack.c.bf16 %v230_v49, %v227_v46 }
 0x105   :  { %2776 = vmatprep.subr.bf16.mxu1 %v3223_v45 }
 0x108   :  { %2777 = vmatpush3.bf16.msra.mxu1 %v3223_v45 }
 0x109   :  { %2778 = vmatprep.subr.bf16.mxu1 %v3224_v51 }
 0x10c   :  { %2779 = vmatpush3.bf16.msra.mxu1 %v3224_v51 }
 0x10d   :  { %2780 = vmatprep.subr.bf16.mxu1 %v3225_v52 }
 0x110   :  { %2781 = vmatpush3.bf16.msra.mxu1 %v3225_v52 }
 0x111   :  { %2782 = vmatprep.subr.bf16.mxu1 %v3226_v53 }
 0x114   :  { %2783 = vmatpush3.bf16.msra.mxu1 %v3226_v53 }
 0x115   :  { %2784 = vmatprep.subr.bf16.mxu1 %v3227_v54 }
 0x118   :  { %2785 = vmatpush3.bf16.msra.mxu1 %v3227_v54 }
 0x119   :  { %2786 = vmatprep.subr.bf16.mxu1 %v3228_v55 }
 0x11c   :  { %2787 = vmatpush3.bf16.msra.mxu1 %v3228_v55 }
 0x11d   :  { %2792 = vmatprep.subr.bf16.mxu1 %v3229_v56 }
 0x11f   :  { %2789 = vmatmul.mubr.bf16.vlgmr.msra.gmra.mrb[0].mxu1 %v243_v34 }
 0x120   :  { %2793 = vmatpush3.bf16.msra.mxu1 %v3229_v56  ;;  %2808 = vmatprep.mubr.bf16.mxu1 %v246_v50 }
 0x121   :  { %2794 = vmatprep.subr.bf16.mxu1 %v3230_v57 }
 0x124   :  { %2795 = vmatpush3.bf16.msra.mxu1 %v3230_v57 }
 0x125   :  { %2796 = vmatprep.subr.bf16.mxu1 %v3231_v58 }
 0x128   :  { %2797 = vmatpush3.bf16.msra.mxu1 %v3231_v58 }
 0x129   :  { %2798 = vmatprep.subr.bf16.mxu1 %v3232_v59 }
 0x12c   :  { %2799 = vmatpush3.bf16.msra.mxu1 %v3232_v59 }
 0x12d   :  { %2800 = vmatprep.subr.bf16.mxu1 %v3233_v60 }
 0x130   :  { %2801 = vmatpush3.bf16.msra.mxu1 %v3233_v60  ;;  %v2426_v60 = vld [vmem:[%s4107_s4] ss:$0 sm:$0xff]  ;;  %s3312_s4 = smov 8  }
 0x131   :  { %2802 = vmatprep.subr.bf16.mxu1 %v3234_v61 }
 0x134   :  { %2803 = vmatpush3.bf16.msra.mxu1 %v3234_v61 }
 0x135   :  { %2804 = vmatprep.subr.bf16.mxu1 %v3235_v62 }
 0x138   :  { %2805 = vmatpush3.bf16.msra.mxu1 %v3235_v62 }
 0x139   :  { %2806 = vmatprep.subr.bf16.mxu1 %v3236_v63 }
 0x13c   :  { %2807 = vmatpush3.bf16.msra.mxu1 %v3236_v63 }
 0x13d   :  { %3075 = vmatprep.subr.bf16.mxu1 %v3309_v21 }
 0x13f   :  { %2809 = vmatmul.mubr.bf16.vlgmr.msra.gmra.mrb[0].mxu1 %v247_v48 }
 0x140   :  { %2914 = vmatprep.mubr.msk.f32.mxu1 %vm3310_vm2, %v3311_v15 }
 0x212   :  { %v2810_v16 = vpop.f32.mrb[0].mxu1 }
 0x213   :  { %v574_v17 = vpop.f32.mrb[1].mxu1 }
 0x214   :  { %v2811_v18 = vpop.f32.mrb[2].mxu1 }
 0x215   :  { %v577_v19 = vpop.f32.mrb[3].mxu1 }
 0x216   :  { %v593_v20 = vadd.f32 %v577_v19, %v574_v17 }
 0x218   :  { %v594_v22 = vadd.f32 %v2810_v16, %v593_v20 }
 0x21a   :  { %v595_v23 = vadd.f32 %v2811_v18, %v594_v22  ;;  %v3313_v22 = vmov 0  }
 0x21c   :  { %v596_v24 = vrot.slane %v595_v23, 4 }
 0x21e   :  { %v597_v26 = vadd.f32 %v596_v24, %v595_v23 }
 0x220   :  { %v598_v28 = vrot.slane %v597_v26, 2 }
 0x222   :  { %v599_v29 = vadd.f32 %v598_v28, %v597_v26 }
 0x224   :  { %v600_v31 = vrot.slane %v599_v29, 1 }
 0x226   :  { %v601_v32 = vadd.f32 %v600_v31, %v599_v29 }
 0x228   :  { %2845 = vmatmul.mubr.f32.vlgmr.msra.gmra.mrb[12].mxu0 %v601_v32 }
 0x229   :  { %3053 = vmatpush3.bf16.msra.mxu0 %v3488_v25  ;;  %2879 = vmatprep.mubr.msk.f32.mxu0 %vm3310_vm2, %v3311_v15  ;;  %v689_v25 = vlaneseq }
 0x22a   :  { %3054 = vmatprep.subr.bf16.mxu0 %v3309_v21 }
 0x22d   :  { %3056 = vmatpush3.bf16.msra.mxu0 %v3494_v27  ;;  %v690_v27 = vshrl.u32 %v689_v25, 7 }
 0x22e   :  { %3057 = vmatprep.subr.bf16.mxu0 %v3309_v21 }
 0x22f   :  { %v3614_v33 = vsub.s32 0, %v690_v27 }
 0x231   :  { %3059 = vmatpush3.bf16.msra.mxu0 %v3504_v30 }
 0x232   :  { %3060 = vmatprep.subr.bf16.mxu0 %v3309_v21 }
 0x235   :  { %3062 = vmatpush3.bf16.msra.mxu0 %v3037_v2 }
 0x236   :  { %3063 = vmatprep.subr.bf16.mxu0 %v3309_v21 }
 0x239   :  { %3065 = vmatpush3.bf16.msra.mxu0 %v3040_v5 }
 0x23a   :  { %3066 = vmatprep.subr.bf16.mxu0 %v3309_v21 }
 0x23d   :  { %3068 = vmatpush3.bf16.msra.mxu0 %v3043_v8 }
 0x23e   :  { %3069 = vmatprep.subr.bf16.mxu0 %v3309_v21 }
 0x241   :  { %3071 = vmatpush3.bf16.msra.mxu0 %v3046_v11 }
 0x242   :  { %3072 = vmatprep.subr.bf16.mxu0 %v3309_v21 }
 0x245   :  { %3074 = vmatpush3.bf16.msra.mxu0 %v3049_v14 }
 0x2fb   :  { %v684_v30 = vpop.f32.mrb[12].mxu0 }
 0x2fc   :  { %v688_v34 = vmul.f32 0.001953125, %v684_v30  ;;  %v2846_v35 = vpop.f32.mrb[13].mxu0 }
 0x2fe   :  { %v692_v36 = vrot.slane %v688_v34, %v3614_v33 }
 0x300   :  { %v693_v37 = vsub.f32 %v574_v17, %v692_v36  ;;  %v694_v38 = vsub.f32 %v577_v19, %v692_v36  ;;  %v695_v39 = vsub.f32 %v2810_v16, %v692_v36  ;;  %v696_v40 = vsub.f32 %v2811_v18, %v692_v36 }
 0x302   :  { %v697_v41 = vmul.f32 %v693_v37, %v693_v37  ;;  %v698_v42 = vmul.f32 %v694_v38, %v694_v38  ;;  %v699_v43 = vmul.f32 %v695_v39, %v695_v39  ;;  %v700_v45 = vmul.f32 %v696_v40, %v696_v40 }
 0x304   :  { %v701_v44 = vadd.f32 %v698_v42, %v697_v41 }
 0x306   :  { %v702_v46 = vadd.f32 %v701_v44, %v699_v43 }
 0x308   :  { %v703_v47 = vadd.f32 %v702_v46, %v700_v45 }
 0x30a   :  { %v704_v48 = vrot.slane %v703_v47, 4 }
 0x30c   :  { %v705_v49 = vadd.f32 %v704_v48, %v703_v47  ;;  %v3237_v47 = vld [vmem:[%s4109_s6] sm:$0xff]   ;;  %v3240_v48 = vld [vmem:[%s4110_s7 + $0x48] sm:$0xff]  }
 0x30e   :  { %v706_v50 = vrot.slane %v705_v49, 2 }
 0x310   :  { %v707_v51 = vadd.f32 %v706_v50, %v705_v49  ;;  %v3241_v49 = vld [vmem:[%s4110_s7 + $0x50] sm:$0xff]   ;;  %v3238_v50 = vld [vmem:[%s4109_s6 + $0x8] sm:$0xff]  }
 0x312   :  { %v708_v52 = vrot.slane %v707_v51, 1 }
 0x314   :  { %v709_v53 = vadd.f32 %v708_v52, %v707_v51  ;;  %v3242_v51 = vld [vmem:[%s4110_s7 + $0x58] sm:$0xff]   ;;  %v3243_v52 = vld [vmem:[%s4110_s7 + $0x60] sm:$0xff]  }
 0x316   :  { %2880 = vmatmul.mubr.f32.vlgmr.msra.gmra.mrb[14].mxu0 %v709_v53  ;;  %v3239_v53 = vld [vmem:[%s4109_s6 + $0x10] sm:$0xff]   ;;  %s3314_s6 = smov 16  }
 0x317   :  { %966 = vmatprep.mubr.bf16.mxu0 %v3313_v22 }
 0x3e9   :  { %v776_v54 = vpop.f32.mrb[14].mxu0 }
 0x3ea   :  { %v780_v55 = vmul.f32 0.001953125, %v776_v54  ;;  %v2881_v56 = vpop.f32.mrb[15].mxu0  ;;  %v3244_v54 = vld [vmem:[%s4110_s7 + $0x68] sm:$0xff]  }
 0x3eb   :  { %v3246_v56 = vld [vmem:[%s4110_s7 + $0x78] sm:$0xff]  }
 0x3ec   :  { %v781_v57 = vadd.f32 1e-05, %v780_v55  ;;  %v3245_v55 = vld [vmem:[%s4110_s7 + $0x70] sm:$0xff]  }
 0x3ee   :  { %3299 = vrsqrt.f32 %v781_v57  ;;  %v3247_v57 = vld [vmem:[%s4110_s7 + $0x80] sm:$0xff]  }
 0x3f8   :  { %v3300_v58 = vpop.eup %3299 }
 0x3f9   :  { %v786_v59 = vrot.slane %v3300_v58, %v3614_v33  ;;  %v3248_v58 = vld [vmem:[%s4110_s7 + $0x88] sm:$0xff]  }
 0x3fb   :  { %v788_v61 = vmul.f32 %v786_v59, %v694_v38  ;;  %v787_v62 = vmul.f32 %v786_v59, %v693_v37  ;;  %v789_v63 = vmul.f32 %v786_v59, %v695_v39  ;;  %v790_v0 = vmul.f32 %v786_v59, %v696_v40  ;;  %v1362_v59 = vld [vmem:[%s4111_s8] sm:$0xff] }
 0x3fd   :  { %v799_v2 = vmul.f32 %v2426_v60, %v788_v61  ;;  %v798_v3 = vmul.f32 %v2426_v60, %v787_v62  ;;  %v800_v4 = vmul.f32 %v2426_v60, %v789_v63  ;;  %v801_v5 = vmul.f32 %v2426_v60, %v790_v0  ;;  %v1363_v60 = vld [vmem:[%s4111_s8 + $0x8] sm:$0xff]  ;;  %v1364_v61 = vld [vmem:[%s4111_s8 + $0x10] sm:$0xff]  ;;  %v1365_v63 = vld [vmem:[%s4111_s8 + $0x18] sm:$0xff] }
 0x3fe   :  { %v3698_v62 = vpack.c.bf16 %v1363_v60, %v1362_v59  ;;  %v3704_v0 = vpack.c.bf16 %v1365_v63, %v1364_v61 }
 0x3ff   :  { %v810_v6 = vadd.f32 %v2427_v1, %v799_v2  ;;  %v809_v7 = vadd.f32 %v2427_v1, %v798_v3  ;;  %v811_v8 = vadd.f32 %v2427_v1, %v800_v4  ;;  %v812_v9 = vadd.f32 %v2427_v1, %v801_v5  ;;  %v1366_v1 = vld [vmem:[%s4111_s8 + $0x20] sm:$0xff]  ;;  %v1367_v2 = vld [vmem:[%s4111_s8 + $0x28] sm:$0xff]  ;;  %v1368_v4 = vld [vmem:[%s4111_s8 + $0x30] sm:$0xff] }
 0x400   :  { %3077 = vmatpush3.bf16.msra.mxu1 %v3698_v62  ;;  %v3714_v3 = vpack.c.bf16 %v1367_v2, %v1366_v1  ;;  %v1369_v5 = vld [vmem:[%s4111_s8 + $0x38] sm:$0xff] }
 0x401   :  { %v814_v10 = vmax.f32 %v810_v6, 0.0  ;;  %v813_v11 = vmax.f32 %v809_v7, 0.0  ;;  %v815_v14 = vmax.f32 %v811_v8, 0.0  ;;  %v816_v16 = vmax.f32 %v812_v9, 0.0  ;;  %3078 = vmatprep.subr.bf16.mxu1 %v3309_v21 }
 0x402   :  { %v3724_v6 = vpack.c.bf16 %v1369_v5, %v1368_v4 }
 0x403   :  { %v833_v12 = vrot.slane %v814_v10, 7  ;;  %v832_v13 = vrot.slane %v813_v11, 7  ;;  %v859_v17 = vrot.slane %v815_v14, 5  ;;  %v860_v19 = vrot.slane %v816_v16, 5 }
 0x404   :  { %3080 = vmatpush3.bf16.msra.mxu1 %v3704_v0 }
 0x405   :  { %839 = vrot.lane.b32.xlu1 %v833_v12, %s3312_s4  ;;  %835 = vrot.lane.b32.xlu0 %v832_v13, %s3312_s4  ;;  %v834_v18 = vsel %vm831_vm5, %v832_v13, %v833_v12  ;;  %v861_v20 = vsel %vm858_vm6, %v859_v17, %v860_v19  ;;  %vm1569_vm5 = vcmask 257024   ;;  %vm1589_vm6 = vcmask 1047683  }
 0x406   :  { %3081 = vmatprep.subr.bf16.mxu1 %v3309_v21  ;;  %1570 = vst.msk [vmem:[#allocation3 + $0x28] sm:$0xf] %vm1569_vm5, %v3311_v15 }
 0x408   :  { %3083 = vmatpush3.bf16.msra.mxu1 %v3714_v3 }
 0x409   :  { %862 = vrot.lane.b32.xlu1 %v859_v17, %s3312_s4  ;;  %837 = vrot.lane.b32.xlu0 %v834_v18, %s3312_s4 }
 0x40a   :  { %3084 = vmatprep.subr.bf16.mxu1 %v3309_v21 }
 0x40c   :  { %3086 = vmatpush3.bf16.msra.mxu1 %v3724_v6 }
 0x40d   :  { %866 = vrot.lane.b32.xlu1 %v860_v19, %s3312_s4  ;;  %864 = vrot.lane.b32.xlu0 %v861_v20, %s3312_s4  ;;  %v3249_v20 = vld [vmem:[%s4110_s7] sm:$0xff]  }
 0x40e   :  { %3087 = vmatprep.subr.bf16.mxu1 %v3309_v21 }
 0x477   :  { %v840_v23 = vpop.permute.xlu1 %839  ;;  %v836_v24 = vpop.permute.xlu0 %835 }
 0x478   :  { %853 = vst.msk [vmem:[#allocation2 + $0x20] sm:$0x1] %vm852_vm7, %v840_v23  ;;  %vm1591_vm7 = vcmask 130051  }
 0x479   :  { %855 = vst.msk [vmem:[#allocation2 + $0x28] sm:$0x1] %vm854_vm8, %v840_v23  ;;  %v3250_v23 = vld [vmem:[%s4110_s7 + $0x8] sm:$0xff]   ;;  %vm1593_vm8 = vcmask 1042560  }
 0x47a   :  { %845 = vst.msk [vmem:[#allocation2] sm:$0xfe] %vm844_vm9, %v836_v24  ;;  %vm1595_vm9 = vcmask 124928  }
 0x47b   :  { %847 = vst.msk [vmem:[#allocation2 + $0x8] sm:$0xfe] %vm846_vm10, %v836_v24  ;;  %v863_v26 = vpop.permute.xlu1 %862  ;;  %v838_v28 = vpop.permute.xlu0 %837  ;;  %vm1576_vm10 = vcmask 1047681  }
 0x47c   :  { %872 = vst.msk [vmem:[#allocation2 + $0x20] sm:$0xf8] %vm871_vm11, %v863_v26  ;;  %vm1578_vm11 = vcmask 130049  }
 0x47d   :  { %874 = vst.msk [vmem:[#allocation2 + $0x28] sm:$0xf8] %vm873_vm12, %v863_v26  ;;  %vm1580_vm12 = vcmask 1040512  }
 0x47e   :  { %849 = vst.msk [vmem:[#allocation2 + $0x10] sm:$0xff] %vm848_vm13, %v838_v28 }
 0x47f   :  { %851 = vst.msk [vmem:[#allocation2 + $0x18] sm:$0xff] %vm850_vm14, %v838_v28  ;;  %v867_v29 = vpop.permute.xlu1 %866  ;;  %v865_v31 = vpop.permute.xlu0 %864 }
 0x480   :  { %878 = vst.msk [vmem:[#allocation2 + $0x40] sm:$0x7] %vm877_vm15, %v867_v29  ;;  %vm1618_vm15 = vcmask 162816  }
 0x481   :  { %880 = vst.msk [vmem:[#allocation2 + $0x48] sm:$0x7] %vm879_vm0, %v867_v29  ;;  %v881_v27 = vld [vmem:[#allocation2] sm:$0xff] }
 0x482   :  { %875 = vst.msk [vmem:[#allocation2 + $0x30] sm:$0xff] %vm848_vm13, %v865_v31  ;;  %v882_v32 = vld [vmem:[#allocation2 + $0x8] sm:$0xff]  ;;  %vm1582_vm13 = vcmask 122880  }
 0x483   :  { %876 = vst.msk [vmem:[#allocation2 + $0x38] sm:$0xff] %vm850_vm14, %v865_v31  ;;  %v885_v37 = vld [vmem:[#allocation2 + $0x20] sm:$0xff] }
 0x484   :  { %v886_v36 = vld [vmem:[#allocation2 + $0x28] sm:$0xff] }
 0x485   :  { %v883_v30 = vld [vmem:[#allocation2 + $0x10] sm:$0xff] }
 0x486   :  { %v884_v25 = vld [vmem:[#allocation2 + $0x18] sm:$0xff]  ;;  %v891_v35 = vpack.c.bf16 %v883_v30, %v881_v27  ;;  %v3253_v30 = vld [vmem:[%s4110_s7 + $0x20] sm:$0xff]  }
 0x487   :  { %v892_v34 = vpack.c.bf16 %v884_v25, %v882_v32  ;;  %v889_v43 = vld [vmem:[#allocation2 + $0x40] sm:$0xf]  ;;  %v3251_v32 = vld [vmem:[%s4110_s7 + $0x10] sm:$0xff]   ;;  %v3252_v27 = vld [vmem:[%s4110_s7 + $0x18] sm:$0xff]  }
 0x488   :  { %v890_v40 = vld [vmem:[#allocation2 + $0x48] sm:$0xf]  ;;  %v895_v45 = vpack.c.bf16 %v889_v43, %v889_v43  ;;  %v3263_v43 = vld [vmem:[%s4110_s7 + $0xb8] sm:$0xff]  }
 0x489   :  { %934 = vmatprep.subr.bf16.mxu0 %v892_v34  ;;  %v887_v39 = vld [vmem:[#allocation2 + $0x30] sm:$0xff]  ;;  %v896_v44 = vpack.c.bf16 %v890_v40, %v890_v40  ;;  %v3254_v34 = vld [vmem:[%s4110_s7 + $0x28] sm:$0xff]   ;;  %v3260_v40 = vld [vmem:[%s4110_s7 + $0xa0] sm:$0xff]  }
 0x48a   :  { %935 = vmatpush1.bf16.msra.mxu0 %v891_v35  ;;  %v888_v38 = vld [vmem:[#allocation2 + $0x38] sm:$0xff]  ;;  %v893_v42 = vpack.c.bf16 %v887_v39, %v885_v37  ;;  %v929_v46 = vsel %vm157_vm1, %v895_v45, 0  ;;  %v3255_v35 = vld [vmem:[%s4110_s7 + $0x30] sm:$0xff]   ;;  %v3257_v37 = vld [vmem:[%s4110_s7 + $0x40] sm:$0xff]  }
 0x48b   :  { %v894_v41 = vpack.c.bf16 %v888_v38, %v886_v36  ;;  %v3256_v36 = vld [vmem:[%s4110_s7 + $0x38] sm:$0xff]   ;;  %v3258_v38 = vld [vmem:[%s4110_s7 + $0x90] sm:$0xff]   ;;  %v3265_v45 = vld [vmem:[%s4110_s7 + $0xc8] sm:$0xff]  }
 0x48c   :  { %v3259_v39 = vld [vmem:[%s4110_s7 + $0x98] sm:$0xff]  }
 0x48d   :  { %936 = vmatprep.subr.bf16.mxu0 %v894_v41  ;;  %v3261_v41 = vld [vmem:[%s4110_s7 + $0xa8] sm:$0xff]  }
 0x48e   :  { %937 = vmatpush1.bf16.msra.mxu0 %v893_v42  ;;  %v3262_v42 = vld [vmem:[%s4110_s7 + $0xb0] sm:$0xff]  }
 0x48f   :  { %2431 = vmatprep.subr.msk.bf16.mxu0 %vm157_vm1, %v896_v44  ;;  %v3264_v44 = vld [vmem:[%s4110_s7 + $0xc0] sm:$0xff]  }
 0x492   :  { %939 = vmatpush1.bf16.msra.mxu0 %v929_v46  ;;  %v3266_v46 = vld [vmem:[%s4110_s7 + $0xd0] sm:$0xff]  }
 0x493   :  { %1097 = vmatprep.subr.bf16.mxu0 %v3313_v22 }
 0x495   :  { %2432 = vmatmul.mubr.msk.bf16.vlgmr.msra.gmra.mrb[16].mxu0 %vm918_vm4, %v3237_v47  ;;  %v1370_v47 = vld [vmem:[%s4111_s8 + $0x40] sm:$0xff] }
 0x496   :  { %976 = vmatprep.mubr.bf16.mxu0 %v3313_v22  ;;  %1098 = vmatpush1.bf16.msra.mxu0 %v3240_v48  ;;  %v1371_v48 = vld [vmem:[%s4111_s8 + $0x48] sm:$0xff] }
 0x497   :  { %1099 = vmatprep.subr.bf16.mxu0 %v3313_v22 }
 0x49a   :  { %1100 = vmatpush1.bf16.msra.mxu0 %v3241_v49  ;;  %v3088_v49 = vpack.c.bf16 %v1371_v48, %v1370_v47  ;;  %v3273_v47 = vld [vmem:[%s4115_s12 + $0x70] sm:$0xff]   ;;  %v3274_v48 = vld [vmem:[%s4115_s12 + $0x78] sm:$0xff]  }
 0x49b   :  { %1101 = vmatprep.subr.bf16.mxu0 %v3313_v22 }
 0x49c   :  { %3089 = vmatpush3.bf16.msra.mxu1 %v3088_v49 }
 0x49d   :  { %2433 = vmatmul.mubr.msk.bf16.gmra.mrb[20].mxu0 %vm918_vm4, %v3238_v50  ;;  %3090 = vmatprep.subr.bf16.mxu1 %v3309_v21  ;;  %v1372_v50 = vld [vmem:[%s4111_s8 + $0x50] sm:$0xff] }
 0x49e   :  { %986 = vmatprep.mubr.bf16.mxu0 %v3313_v22  ;;  %1102 = vmatpush1.bf16.msra.mxu0 %v3242_v51  ;;  %v1373_v51 = vld [vmem:[%s4111_s8 + $0x58] sm:$0xff] }
 0x49f   :  { %1103 = vmatprep.subr.bf16.mxu0 %v3313_v22 }
 0x4a2   :  { %1104 = vmatpush1.bf16.msra.mxu0 %v3243_v52  ;;  %v3091_v52 = vpack.c.bf16 %v1373_v51, %v1372_v50  ;;  %v3276_v50 = vld [vmem:[%s4115_s12 + $0x88] sm:$0xff]  }
 0x4a3   :  { %1105 = vmatprep.subr.bf16.mxu0 %v3313_v22 }
 0x4a4   :  { %3092 = vmatpush3.bf16.msra.mxu1 %v3091_v52 }
 0x4a5   :  { %2434 = vmatmul.mubr.msk.bf16.gmra.mrb[24].mxu0 %vm918_vm4, %v3239_v53  ;;  %3093 = vmatprep.subr.bf16.mxu1 %v3309_v21  ;;  %v1374_v53 = vld [vmem:[%s4111_s8 + $0x60] sm:$0xff] }
 0x4a6   :  { %1106 = vmatpush1.bf16.msra.mxu0 %v3244_v54  ;;  %v1375_v54 = vld [vmem:[%s4111_s8 + $0x68] sm:$0xff] }
 0x4a7   :  { %1107 = vmatprep.subr.bf16.mxu0 %v3313_v22 }
 0x4aa   :  { %1108 = vmatpush1.bf16.msra.mxu0 %v3245_v55  ;;  %v3094_v55 = vpack.c.bf16 %v1375_v54, %v1374_v53 }
 0x4ab   :  { %1109 = vmatprep.subr.bf16.mxu0 %v3313_v22 }
 0x4ac   :  { %3095 = vmatpush3.bf16.msra.mxu1 %v3094_v55 }
 0x4ad   :  { %3096 = vmatprep.subr.bf16.mxu1 %v3309_v21 }
 0x4ae   :  { %1110 = vmatpush1.bf16.msra.mxu0 %v3246_v56  ;;  %v1376_v56 = vld [vmem:[%s4111_s8 + $0x70] sm:$0xff] }
 0x4af   :  { %1111 = vmatprep.subr.bf16.mxu0 %v3313_v22 }
 0x4b2   :  { %1112 = vmatpush1.bf16.msra.mxu0 %v3247_v57  ;;  %v1377_v57 = vld [vmem:[%s4111_s8 + $0x78] sm:$0xff] }
 0x4b3   :  { %1113 = vmatprep.subr.bf16.mxu0 %v3313_v22 }
 0x4b6   :  { %1114 = vmatpush1.bf16.msra.mxu0 %v3248_v58  ;;  %v3097_v58 = vpack.c.bf16 %v1377_v57, %v1376_v56 }
 0x4b7   :  { %1195 = vmatprep.subr.bf16.mxu0 %v3313_v22 }
 0x4b8   :  { %3098 = vmatpush3.bf16.msra.mxu1 %v3097_v58 }
 0x4b9   :  { %3099 = vmatprep.subr.bf16.mxu1 %v3309_v21 }
 0x568   :  { %v968_v7 = vpop.f32.mrb[16].mxu0 }
 0x569   :  { %v970_v8 = vpop.f32.mrb[17].mxu0 }
 0x56a   :  { %v972_v9 = vpop.f32.mrb[18].mxu0 }
 0x56b   :  { %v997_v10 = vpack.c.bf16 %v972_v9, %v968_v7  ;;  %v974_v11 = vpop.f32.mrb[19].mxu0 }
 0x56c   :  { %v998_v12 = vpack.c.bf16 %v974_v11, %v970_v8 }
 0x570   :  { %v978_v13 = vpop.f32.mrb[20].mxu0 }
 0x571   :  { %v980_v14 = vpop.f32.mrb[21].mxu0 }
 0x572   :  { %v982_v16 = vpop.f32.mrb[22].mxu0 }
 0x573   :  { %v999_v17 = vpack.c.bf16 %v982_v16, %v978_v13  ;;  %v984_v18 = vpop.f32.mrb[23].mxu0 }
 0x574   :  { %v1000_v19 = vpack.c.bf16 %v984_v18, %v980_v14 }
 0x576   :  { %2462 = vmatprep.mubr.msk.bf16.mxu0 %vm818_vm3, %v1000_v19 }
 0x577   :  { %1130 = vmatmul.mubr.bf16.vlgmr.msra.gmra.mrb[28].mxu0 %v999_v17 }
 0x578   :  { %1196 = vmatpush1.bf16.msra.mxu0 %v3249_v20  ;;  %2472 = vmatprep.mubr.msk.bf16.mxu0 %vm818_vm3, %v998_v12  ;;  %v988_v24 = vpop.f32.mrb[24].mxu0 }
 0x579   :  { %1197 = vmatprep.subr.bf16.mxu0 %v3313_v22  ;;  %v990_v26 = vpop.f32.mrb[25].mxu0 }
 0x57a   :  { %v992_v28 = vpop.f32.mrb[26].mxu0 }
 0x57b   :  { %v1001_v29 = vpack.c.bf16 %v992_v28, %v988_v24  ;;  %v994_v31 = vpop.f32.mrb[27].mxu0 }
 0x57c   :  { %1198 = vmatpush1.bf16.msra.mxu0 %v3250_v23  ;;  %v1002_v25 = vpack.c.bf16 %v994_v31, %v990_v26 }
 0x57d   :  { %1199 = vmatprep.subr.bf16.mxu0 %v3313_v22 }
 0x580   :  { %1200 = vmatpush1.bf16.msra.mxu0 %v3251_v32 }
 0x581   :  { %1201 = vmatprep.subr.bf16.mxu0 %v3313_v22 }
 0x584   :  { %1202 = vmatpush1.bf16.msra.mxu0 %v3252_v27 }
 0x585   :  { %1203 = vmatprep.subr.bf16.mxu0 %v3313_v22 }
 0x588   :  { %1204 = vmatpush1.bf16.msra.mxu0 %v3253_v30 }
 0x589   :  { %1205 = vmatprep.subr.bf16.mxu0 %v3313_v22 }
 0x58c   :  { %1206 = vmatpush1.bf16.msra.mxu0 %v3254_v34  ;;  %v2502_v34 = vld [vmem:[%s4113_s10] ss:$0 sm:$0xff] }
 0x58d   :  { %1207 = vmatprep.subr.bf16.mxu0 %v3313_v22 }
 0x590   :  { %1208 = vmatpush1.bf16.msra.mxu0 %v3255_v35 }
 0x591   :  { %1209 = vmatprep.subr.bf16.mxu0 %v3313_v22 }
 0x594   :  { %1210 = vmatpush1.bf16.msra.mxu0 %v3256_v36 }
 0x595   :  { %1211 = vmatprep.subr.bf16.mxu0 %v3313_v22 }
 0x598   :  { %1212 = vmatpush1.bf16.msra.mxu0 %v3257_v37 }
 0x599   :  { %1312 = vmatprep.subr.bf16.mxu0 %v3313_v22 }
 0x59b   :  { %1228 = vmatmul.mubr.bf16.vlgmr.msra.gmra.mrb[28].mxu0 %v997_v10 }
 0x59c   :  { %1313 = vmatpush1.bf16.msra.mxu0 %v3258_v38  ;;  %2500 = vmatprep.mubr.msk.bf16.mxu0 %vm818_vm3, %v1002_v25  ;;  %vm1564_vm3 = vcmask 261120   ;;  %v2501_v25 = vld [vmem:[%s4112_s9] ss:$0 sm:$0xff] }
 0x59d   :  { %1314 = vmatprep.subr.bf16.mxu0 %v3313_v22  ;;  %1567 = vst.msk [vmem:[#allocation3 + $0x18] sm:$0xff] %vm1564_vm3, %v3311_v15  ;;  %1565 = vst.msk [vmem:[#allocation3 + $0x8] sm:$0xff] %vm1564_vm3, %v3311_v15 }
 0x5a0   :  { %1315 = vmatpush1.bf16.msra.mxu0 %v3259_v39 }
 0x5a1   :  { %1316 = vmatprep.subr.bf16.mxu0 %v3313_v22 }
 0x5a4   :  { %1317 = vmatpush1.bf16.msra.mxu0 %v3260_v40 }
 0x5a5   :  { %1318 = vmatprep.subr.bf16.mxu0 %v3313_v22 }
 0x5a8   :  { %1319 = vmatpush1.bf16.msra.mxu0 %v3261_v41 }
 0x5a9   :  { %1320 = vmatprep.subr.bf16.mxu0 %v3313_v22 }
 0x5ac   :  { %1321 = vmatpush1.bf16.msra.mxu0 %v3262_v42 }
 0x5ad   :  { %1322 = vmatprep.subr.bf16.mxu0 %v3313_v22 }
 0x5b0   :  { %1323 = vmatpush1.bf16.msra.mxu0 %v3263_v43  ;;  %v3269_v43 = vld [vmem:[%s4115_s12 + $0x50] sm:$0xff]  }
 0x5b1   :  { %1324 = vmatprep.subr.bf16.mxu0 %v3313_v22 }
 0x5b4   :  { %1325 = vmatpush1.bf16.msra.mxu0 %v3264_v44  ;;  %v3270_v44 = vld [vmem:[%s4115_s12 + $0x58] sm:$0xff]  }
 0x5b5   :  { %1326 = vmatprep.subr.bf16.mxu0 %v3313_v22 }
 0x5b8   :  { %1327 = vmatpush1.bf16.msra.mxu0 %v3265_v45  ;;  %v3271_v45 = vld [vmem:[%s4115_s12 + $0x60] sm:$0xff]  }
 0x5b9   :  { %1328 = vmatprep.subr.bf16.mxu0 %v3313_v22 }
 0x5bc   :  { %1329 = vmatpush1.bf16.msra.mxu0 %v3266_v46  ;;  %v3272_v46 = vld [vmem:[%s4115_s12 + $0x68] sm:$0xff]  }
 0x5bf   :  { %1345 = vmatmul.mubr.bf16.vlgmr.msra.gmra.mrb[28].mxu0 %v1001_v29 }
 0x5c0   :  { %1663 = vmatprep.mubr.bf16.mxu0 %v3313_v22 }
 0x692   :  { %v1346_v59 = vpop.f32.mrb[28].mxu0 }
 0x693   :  { %v1348_v60 = vpop.f32.mrb[29].mxu0 }
 0x694   :  { %v1349_v61 = vpop.f32.mrb[30].mxu0 }
 0x695   :  { %v1355_v63 = vadd.f32 %v1349_v61, %v1346_v59  ;;  %v1351_v1 = vpop.f32.mrb[31].mxu0 }
 0x697   :  { %v1356_v2 = vrot.slane %v1355_v63, 4 }
 0x699   :  { %v1357_v4 = vadd.f32 %v1356_v2, %v1355_v63  ;;  %v3267_v2 = vld [vmem:[%s4114_s11] sm:$0xff]  }
 0x69b   :  { %v1358_v5 = vrot.slane %v1357_v4, 2 }
 0x69d   :  { %v1359_v7 = vadd.f32 %v1358_v5, %v1357_v4  ;;  %v3268_v4 = vld [vmem:[%s4114_s11 + $0x8] ss:$0 sps:$4 sm:$0xff]   ;;  %v3277_v5 = vld [vmem:[%s4115_s12 + $0x90] sm:$0xff]  }
 0x69f   :  { %v1360_v8 = vrot.slane %v1359_v7, 1 }
 0x6a1   :  { %v1361_v9 = vadd.f32 %v1360_v8, %v1359_v7  ;;  %v3278_v7 = vld [vmem:[%s4115_s12 + $0x98] sm:$0xff]   ;;  %v2069_v8 = vld [vmem:[%s4116_s13] sm:$0xff] }
 0x6a3   :  { %2915 = vmatmul.mubr.f32.vlgmr.msra.gmra.mrb[4].mxu1 %v1361_v9  ;;  %v2070_v9 = vld [vmem:[%s4116_s13 + $0x8] sm:$0xff] }
 0x6a4   :  { %3101 = vmatpush3.bf16.msra.mxu1 %v3698_v62  ;;  %2949 = vmatprep.mubr.msk.f32.mxu1 %vm3310_vm2, %v3311_v15 }
 0x6a5   :  { %3102 = vmatprep.subr.bf16.mxu1 %v3309_v21 }
 0x6a8   :  { %3104 = vmatpush3.bf16.msra.mxu1 %v3704_v0 }
 0x6a9   :  { %3105 = vmatprep.subr.bf16.mxu1 %v3309_v21 }
 0x6ac   :  { %3107 = vmatpush3.bf16.msra.mxu1 %v3714_v3 }
 0x6ad   :  { %3108 = vmatprep.subr.bf16.mxu1 %v3309_v21 }
 0x6b0   :  { %3110 = vmatpush3.bf16.msra.mxu1 %v3724_v6 }
 0x6b1   :  { %3111 = vmatprep.subr.bf16.mxu1 %v3309_v21 }
 0x6b4   :  { %3113 = vmatpush3.bf16.msra.mxu1 %v3088_v49  ;;  %v3275_v49 = vld [vmem:[%s4115_s12 + $0x80] sm:$0xff]  }
 0x6b5   :  { %3114 = vmatprep.subr.bf16.mxu1 %v3309_v21 }
 0x6b8   :  { %3116 = vmatpush3.bf16.msra.mxu1 %v3091_v52 }
 0x6b9   :  { %3117 = vmatprep.subr.bf16.mxu1 %v3309_v21 }
 0x6bc   :  { %3119 = vmatpush3.bf16.msra.mxu1 %v3094_v55 }
 0x6bd   :  { %3120 = vmatprep.subr.bf16.mxu1 %v3309_v21 }
 0x6c0   :  { %3122 = vmatpush3.bf16.msra.mxu1 %v3097_v58 }
 0x6c1   :  { %1795 = vmatprep.subr.bf16.mxu1 %v3313_v22 }
 0x776   :  { %v1444_v62 = vpop.f32.mrb[4].mxu1 }
 0x777   :  { %v1448_v0 = vmul.f32 0.0078125, %v1444_v62  ;;  %v2916_v3 = vpop.f32.mrb[5].mxu1  ;;  %v2071_v62 = vld [vmem:[%s4116_s13 + $0x10] sm:$0xff] }
 0x778   :  { %v2072_v3 = vld [vmem:[%s4116_s13 + $0x18] sm:$0xff] }
 0x779   :  { %v1452_v10 = vrot.slane %v1448_v0, %v3614_v33  ;;  %v3920_v0 = vpack.c.bf16 %v2070_v9, %v2069_v8 }
 0x77b   :  { %v1453_v6 = vsub.f32 %v1346_v59, %v1452_v10  ;;  %v1454_v11 = vsub.f32 %v1349_v61, %v1452_v10  ;;  %v3926_v10 = vpack.c.bf16 %v2072_v3, %v2071_v62 }
 0x77d   :  { %v1455_v12 = vmul.f32 %v1453_v6, %v1453_v6  ;;  %v1456_v13 = vmul.f32 %v1454_v11, %v1454_v11 }
 0x77f   :  { %v1457_v14 = vadd.f32 %v1456_v13, %v1455_v12  ;;  %v2075_v13 = vld [vmem:[%s4116_s13 + $0x30] sm:$0xff] }
 0x781   :  { %v1458_v16 = vrot.slane %v1457_v14, 4 }
 0x783   :  { %v1459_v17 = vadd.f32 %v1458_v16, %v1457_v14  ;;  %v2076_v14 = vld [vmem:[%s4116_s13 + $0x38] sm:$0xff] }
 0x784   :  { %v3946_v16 = vpack.c.bf16 %v2076_v14, %v2075_v13 }
 0x785   :  { %v1460_v18 = vrot.slane %v1459_v17, 2 }
 0x787   :  { %v1461_v19 = vadd.f32 %v1460_v18, %v1459_v17  ;;  %v2077_v17 = vld [vmem:[%s4116_s13 + $0x40] sm:$0xff]  ;;  %v2078_v18 = vld [vmem:[%s4116_s13 + $0x48] sm:$0xff] }
 0x789   :  { %v1462_v20 = vrot.slane %v1461_v19, 1 }
 0x78b   :  { %v1463_v23 = vadd.f32 %v1462_v20, %v1461_v19  ;;  %v3956_v19 = vpack.c.bf16 %v2078_v18, %v2077_v17 }
 0x78d   :  { %2950 = vmatmul.mubr.f32.vlgmr.msra.gmra.mrb[6].mxu1 %v1463_v23 }
 0x78e   :  { %1796 = vmatpush1.bf16.msra.mxu1 %v3269_v43  ;;  %v3287_v43 = vld [vmem:[%s4115_s12 + $0x40] sm:$0xff]  }
 0x78f   :  { %1797 = vmatprep.subr.bf16.mxu1 %v3313_v22 }
 0x792   :  { %1798 = vmatpush1.bf16.msra.mxu1 %v3270_v44  ;;  %v3288_v44 = vld [vmem:[%s4115_s12 + $0x48] sm:$0xff]  }
 0x793   :  { %1799 = vmatprep.subr.bf16.mxu1 %v3313_v22 }
 0x796   :  { %1800 = vmatpush1.bf16.msra.mxu1 %v3271_v45  ;;  %v3289_v45 = vld [vmem:[%s4115_s12 + $0xa0] sm:$0xff]  }
 0x797   :  { %1801 = vmatprep.subr.bf16.mxu1 %v3313_v22 }
 0x79a   :  { %1802 = vmatpush1.bf16.msra.mxu1 %v3272_v46 }
 0x79b   :  { %1803 = vmatprep.subr.bf16.mxu1 %v3313_v22 }
 0x79e   :  { %1804 = vmatpush1.bf16.msra.mxu1 %v3273_v47  ;;  %v3290_v47 = vld [vmem:[%s4115_s12 + $0xa8] sm:$0xff]  }
 0x79f   :  { %1805 = vmatprep.subr.bf16.mxu1 %v3313_v22 }
 0x7a2   :  { %1806 = vmatpush1.bf16.msra.mxu1 %v3274_v48  ;;  %v3291_v48 = vld [vmem:[%s4115_s12 + $0xb0] sm:$0xff]  }
 0x7a3   :  { %1807 = vmatprep.subr.bf16.mxu1 %v3313_v22 }
 0x7a6   :  { %1808 = vmatpush1.bf16.msra.mxu1 %v3275_v49  ;;  %v3292_v49 = vld [vmem:[%s4115_s12 + $0xb8] sm:$0xff]  }
 0x7a7   :  { %1809 = vmatprep.subr.bf16.mxu1 %v3313_v22 }
 0x7aa   :  { %1810 = vmatpush1.bf16.msra.mxu1 %v3276_v50  ;;  %v3293_v50 = vld [vmem:[%s4115_s12 + $0xc0] sm:$0xff]  }
 0x7ab   :  { %1811 = vmatprep.subr.bf16.mxu1 %v3313_v22 }
 0x7ae   :  { %1812 = vmatpush1.bf16.msra.mxu1 %v3277_v5 }
 0x7af   :  { %1813 = vmatprep.subr.bf16.mxu1 %v3313_v22 }
 0x7b2   :  { %1814 = vmatpush1.bf16.msra.mxu1 %v3278_v7 }
 0x7b3   :  { %1898 = vmatprep.subr.bf16.mxu1 %v3313_v22 }
 0x860   :  { %v1530_v24 = vpop.f32.mrb[6].mxu1 }
 0x861   :  { %v1534_v26 = vmul.f32 0.0078125, %v1530_v24  ;;  %v2951_v28 = vpop.f32.mrb[7].mxu1 }
 0x863   :  { %v1535_v29 = vadd.f32 1e-05, %v1534_v26 }
 0x865   :  { %3301 = vrsqrt.f32 %v1535_v29 }
 0x86f   :  { %v3302_v31 = vpop.eup %3301 }
 0x870   :  { %v1540_v32 = vrot.slane %v3302_v31, %v3614_v33 }
 0x872   :  { %v1542_v27 = vmul.f32 %v1540_v32, %v1454_v11  ;;  %v1541_v30 = vmul.f32 %v1540_v32, %v1453_v6  ;;  %v2073_v6 = vld [vmem:[%s4116_s13 + $0x20] sm:$0xff]  ;;  %v2074_v11 = vld [vmem:[%s4116_s13 + $0x28] sm:$0xff] }
 0x873   :  { %v3936_v12 = vpack.c.bf16 %v2074_v11, %v2073_v6  ;;  %v3279_v32 = vld [vmem:[%s4115_s12] sm:$0xff]  }
 0x874   :  { %v1551_v35 = vmul.f32 %v2501_v25, %v1542_v27  ;;  %v1550_v36 = vmul.f32 %v2501_v25, %v1541_v30 }
 0x876   :  { %v1560_v37 = vadd.f32 %v2502_v34, %v1551_v35  ;;  %v1559_v38 = vadd.f32 %v2502_v34, %v1550_v36  ;;  %v3280_v34 = vld [vmem:[%s4115_s12 + $0x8] sm:$0xff]  }
 0x878   :  { %v1562_v39 = vmax.f32 %v1560_v37, 0.0  ;;  %v1561_v40 = vmax.f32 %v1559_v38, 0.0  ;;  %v3281_v37 = vld [vmem:[%s4115_s12 + $0x10] sm:$0xff]   ;;  %v3282_v38 = vld [vmem:[%s4115_s12 + $0x18] sm:$0xff]  }
 0x87a   :  { %v1585_v41 = vrot.slane %v1562_v39, 5  ;;  %v1572_v42 = vrot.slane %v1561_v40, 7  ;;  %v3283_v39 = vld [vmem:[%s4115_s12 + $0x20] sm:$0xff]   ;;  %v3284_v40 = vld [vmem:[%s4115_s12 + $0x28] sm:$0xff]  }
 0x87c   :  { %1586 = vrot.lane.b32.xlu1 %v1585_v41, %s3314_s6  ;;  %1573 = vrot.lane.b32.xlu0 %v1572_v42, %s3314_s6  ;;  %v3285_v41 = vld [vmem:[%s4115_s12 + $0x30] sm:$0xff]   ;;  %v3286_v42 = vld [vmem:[%s4115_s12 + $0x38] sm:$0xff]  }
 0x8ee   :  { %v1587_v51 = vpop.permute.xlu1 %1586  ;;  %v1574_v52 = vpop.permute.xlu0 %1573 }
 0x8ef   :  { %1590 = vst.msk [vmem:[#allocation3 + $0x10] sm:$0xf8] %vm1589_vm6, %v1587_v51 }
 0x8f0   :  { %1592 = vst.msk [vmem:[#allocation3 + $0x18] sm:$0xf8] %vm1591_vm7, %v1587_v51 }
 0x8f1   :  { %1594 = vst.msk [vmem:[#allocation3 + $0x20] sm:$0x7] %vm1593_vm8, %v1587_v51 }
 0x8f2   :  { %1596 = vst.msk [vmem:[#allocation3 + $0x28] sm:$0x7] %vm1595_vm9, %v1587_v51  ;;  %v3294_v51 = vld [vmem:[%s4115_s12 + $0xc8] sm:$0xff]  }
 0x8f3   :  { %1577 = vst.msk [vmem:[#allocation3] sm:$0xfe] %vm1576_vm10, %v1574_v52 }
 0x8f4   :  { %1579 = vst.msk [vmem:[#allocation3 + $0x8] sm:$0xfe] %vm1578_vm11, %v1574_v52 }
 0x8f5   :  { %1581 = vst.msk [vmem:[#allocation3 + $0x10] sm:$0x1] %vm1580_vm12, %v1574_v52 }
 0x8f6   :  { %1583 = vst.msk [vmem:[#allocation3 + $0x18] sm:$0x1] %vm1582_vm13, %v1574_v52  ;;  %v3295_v52 = vld [vmem:[%s4115_s12 + $0xd0] sm:$0xff]  }
 0x8f8   :  { %v1601_v59 = vld [vmem:[#allocation3 + $0x20] sm:$0xf] }
 0x8f9   :  { %v1602_v58 = vld [vmem:[#allocation3 + $0x28] sm:$0xf]  ;;  %v1605_v63 = vpack.c.bf16 %v1601_v59, %v1601_v59 }
 0x8fa   :  { %v1597_v55 = vld [vmem:[#allocation3] sm:$0xff]  ;;  %v1606_v61 = vpack.c.bf16 %v1602_v58, %v1602_v58  ;;  %v2080_v58 = vld [vmem:[%s4116_s13 + $0x58] sm:$0xff] }
 0x8fb   :  { %v1598_v53 = vld [vmem:[#allocation3 + $0x8] sm:$0xff]  ;;  %v1626_v1 = vsel %vm157_vm1, %v1605_v63, 0  ;;  %v2083_v63 = vld [vmem:[%s4116_s13 + $0x70] sm:$0xff] }
 0x8fc   :  { %v1599_v57 = vld [vmem:[#allocation3 + $0x10] sm:$0xff] }
 0x8fd   :  { %v1600_v54 = vld [vmem:[#allocation3 + $0x18] sm:$0xff]  ;;  %v1603_v60 = vpack.c.bf16 %v1599_v57, %v1597_v55  ;;  %v2079_v57 = vld [vmem:[%s4116_s13 + $0x50] sm:$0xff] }
 0x8fe   :  { %v1604_v56 = vpack.c.bf16 %v1600_v54, %v1598_v53  ;;  %v3296_v53 = vld [vmem:[%s4115_s12 + $0xd8] sm:$0xff]   ;;  %v3297_v54 = vld [vmem:[%s4115_s12 + $0xe0] sm:$0xff]   ;;  %v3298_v55 = vld [vmem:[%s4115_s12 + $0xe8] sm:$0xff]   ;;  %v3139_v59 = vpack.c.bf16 %v2080_v58, %v2079_v57 }
 0x900   :  { %1631 = vmatprep.subr.bf16.mxu0 %v1604_v56 }
 0x901   :  { %1632 = vmatpush1.bf16.msra.mxu0 %v1603_v60  ;;  %v2082_v60 = vld [vmem:[%s4116_s13 + $0x68] sm:$0xff] }
 0x902   :  { %2505 = vmatprep.subr.msk.bf16.mxu0 %vm157_vm1, %v1606_v61  ;;  %vm2347_vm1 = vcmask 1024  }
 0x905   :  { %1634 = vmatpush1.bf16.msra.mxu0 %v1626_v1  ;;  %v2084_v1 = vld [vmem:[%s4116_s13 + $0x78] sm:$0xff] }
 0x906   :  { %3123 = vmatprep.subr.bf16.mxu0 %v3309_v21 }
 0x908   :  { %2506 = vmatmul.mubr.msk.bf16.vlgmr.msra.gmra.mrb[32].mxu0 %vm1618_vm15, %v3267_v2  ;;  %v3145_v2 = vpack.c.bf16 %v2084_v1, %v2083_v63 }
 0x909   :  { %1673 = vmatprep.mubr.bf16.mxu0 %v3313_v22  ;;  %3125 = vmatpush3.bf16.msra.mxu0 %v3920_v0 }
 0x90a   :  { %3126 = vmatprep.subr.bf16.mxu0 %v3309_v21 }
 0x90d   :  { %3128 = vmatpush3.bf16.msra.mxu0 %v3926_v10 }
 0x90e   :  { %3129 = vmatprep.subr.bf16.mxu0 %v3309_v21 }
 0x910   :  { %2507 = vmatmul.mubr.msk.bf16.gmra.mrb[36].mxu0 %vm1618_vm15, %v3268_v4 }
 0x911   :  { %2984 = vmatprep.mubr.msk.f32.mxu0 %vm3310_vm2, %v3311_v15  ;;  %3131 = vmatpush3.bf16.msra.mxu0 %v3936_v12 }
 0x912   :  { %3132 = vmatprep.subr.bf16.mxu0 %v3309_v21 }
 0x915   :  { %3134 = vmatpush3.bf16.msra.mxu0 %v3946_v16 }
 0x916   :  { %3135 = vmatprep.subr.bf16.mxu0 %v3309_v21 }
 0x919   :  { %3137 = vmatpush3.bf16.msra.mxu0 %v3956_v19 }
 0x91a   :  { %3138 = vmatprep.subr.bf16.mxu0 %v3309_v21 }
 0x91d   :  { %3140 = vmatpush3.bf16.msra.mxu0 %v3139_v59 }
 0x91e   :  { %3141 = vmatprep.subr.bf16.mxu0 %v3309_v21 }
 0x9db   :  { %v1665_v20 = vpop.f32.mrb[32].mxu0 }
 0x9dc   :  { %v1667_v23 = vpop.f32.mrb[33].mxu0 }
 0x9dd   :  { %v1669_v24 = vpop.f32.mrb[34].mxu0 }
 0x9de   :  { %v1682_v26 = vpack.c.bf16 %v1669_v24, %v1665_v20  ;;  %v1671_v28 = vpop.f32.mrb[35].mxu0 }
 0x9df   :  { %v1683_v29 = vpack.c.bf16 %v1671_v28, %v1667_v23 }
 0x9e0   :  { %v1729_v25 = vrot.slane %v1682_v26, 4 }
 0x9e1   :  { %v1730_v31 = vrot.slane %v1683_v29, 4 }
 0x9e3   :  { %2538 = vmatprep.mubr.msk.bf16.mxu1 %vm1564_vm3, %v1730_v31  ;;  %v3965_v27 = vpop.f32.mrb[36].mxu0 }
 0x9e4   :  { %1828 = vmatmul.mubr.bf16.vlgmr.msra.gmra.mrb[8].mxu1 %v1729_v25  ;;  %v1677_v30 = vpop.f32.mrb[37].mxu0  ;;  %v1684_v56 = vpack.c.bf16 %v3965_v27, %v3965_v27  ;;  %v2581_v27 = vld [vmem:[%s4117_s14] ss:$0 sm:$0xff] }
 0x9e5   :  { %1899 = vmatpush1.bf16.msra.mxu1 %v3279_v32  ;;  %2549 = vmatprep.mubr.msk.bf16.mxu1 %vm1564_vm3, %v1683_v29  ;;  %v1679_v35 = vpop.f32.mrb[38].mxu0  ;;  %v1685_v46 = vpack.c.bf16 %v1677_v30, %v1677_v30 }
 0x9e6   :  { %1900 = vmatprep.subr.bf16.mxu1 %v3313_v22  ;;  %v1680_v36 = vpop.f32.mrb[39].mxu0 }
 0x9e9   :  { %1901 = vmatpush1.bf16.msra.mxu1 %v3280_v34  ;;  %v2582_v34 = vld [vmem:[%s4118_s15] ss:$0 sm:$0xff] }
 0x9ea   :  { %1902 = vmatprep.subr.bf16.mxu1 %v3313_v22 }
 0x9ed   :  { %1903 = vmatpush1.bf16.msra.mxu1 %v3281_v37 }
 0x9ee   :  { %1904 = vmatprep.subr.bf16.mxu1 %v3313_v22 }
 0x9f1   :  { %1905 = vmatpush1.bf16.msra.mxu1 %v3282_v38 }
 0x9f2   :  { %1906 = vmatprep.subr.bf16.mxu1 %v3313_v22 }
 0x9f5   :  { %1907 = vmatpush1.bf16.msra.mxu1 %v3283_v39 }
 0x9f6   :  { %1908 = vmatprep.subr.bf16.mxu1 %v3313_v22 }
 0x9f9   :  { %1909 = vmatpush1.bf16.msra.mxu1 %v3284_v40 }
 0x9fa   :  { %1910 = vmatprep.subr.bf16.mxu1 %v3313_v22 }
 0x9fd   :  { %1911 = vmatpush1.bf16.msra.mxu1 %v3285_v41 }
 0x9fe   :  { %1912 = vmatprep.subr.bf16.mxu1 %v3313_v22 }
 0xa01   :  { %1913 = vmatpush1.bf16.msra.mxu1 %v3286_v42 }
 0xa02   :  { %1914 = vmatprep.subr.bf16.mxu1 %v3313_v22 }
 0xa05   :  { %1915 = vmatpush1.bf16.msra.mxu1 %v3287_v43 }
 0xa06   :  { %1916 = vmatprep.subr.bf16.mxu1 %v3313_v22 }
 0xa09   :  { %1917 = vmatpush1.bf16.msra.mxu1 %v3288_v44 }
 0xa0a   :  { %2022 = vmatprep.subr.bf16.mxu1 %v3313_v22 }
 0xa0c   :  { %1931 = vmatmul.mubr.bf16.vlgmr.msra.gmra.mrb[8].mxu1 %v1682_v26 }
 0xa0d   :  { %2023 = vmatpush1.bf16.msra.mxu1 %v3289_v45  ;;  %2580 = vmatprep.mubr.msk.bf16.mxu1 %vm1564_vm3, %v1685_v46 }
 0xa0e   :  { %2024 = vmatprep.subr.bf16.mxu1 %v3313_v22 }
 0xa11   :  { %2025 = vmatpush1.bf16.msra.mxu1 %v3290_v47 }
 0xa12   :  { %2026 = vmatprep.subr.bf16.mxu1 %v3313_v22 }
 0xa15   :  { %2027 = vmatpush1.bf16.msra.mxu1 %v3291_v48 }
 0xa16   :  { %2028 = vmatprep.subr.bf16.mxu1 %v3313_v22 }
 0xa19   :  { %2029 = vmatpush1.bf16.msra.mxu1 %v3292_v49 }
 0xa1a   :  { %2030 = vmatprep.subr.bf16.mxu1 %v3313_v22 }
 0xa1d   :  { %2031 = vmatpush1.bf16.msra.mxu1 %v3293_v50 }
 0xa1e   :  { %2032 = vmatprep.subr.bf16.mxu1 %v3313_v22 }
 0xa21   :  { %2033 = vmatpush1.bf16.msra.mxu1 %v3294_v51 }
 0xa22   :  { %2034 = vmatprep.subr.bf16.mxu1 %v3313_v22 }
 0xa25   :  { %2035 = vmatpush1.bf16.msra.mxu1 %v3295_v52 }
 0xa26   :  { %2036 = vmatprep.subr.bf16.mxu1 %v3313_v22 }
 0xa29   :  { %2037 = vmatpush1.bf16.msra.mxu1 %v3296_v53 }
 0xa2a   :  { %2038 = vmatprep.subr.bf16.mxu1 %v3313_v22 }
 0xa2d   :  { %2039 = vmatpush1.bf16.msra.mxu1 %v3297_v54 }
 0xa2e   :  { %2040 = vmatprep.subr.bf16.mxu1 %v3313_v22  ;;  %v2081_v22 = vld [vmem:[%s4116_s13 + $0x60] sm:$0xff] }
 0xa2f   :  { %v3142_v61 = vpack.c.bf16 %v2082_v60, %v2081_v22 }
 0xa31   :  { %2041 = vmatpush1.bf16.msra.mxu1 %v3298_v55  ;;  %3143 = vmatpush3.bf16.msra.mxu0 %v3142_v61 }
 0xa32   :  { %3144 = vmatprep.subr.bf16.mxu0 %v3309_v21 }
 0xa34   :  { %2055 = vmatmul.mubr.bf16.vlgmr.msra.gmra.mrb[8].mxu1 %v1684_v56 }
 0xa35   :  { %3146 = vmatpush3.bf16.msra.mxu0 %v3145_v2 }
 0xa36   :  { %3147 = vmatprep.subr.bf16.mxu0 %v3309_v21 }
 0xb07   :  { %v2056_v4 = vpop.f32.mrb[8].mxu1 }
 0xb08   :  { %v2063_v5 = vrot.slane %v2056_v4, 4  ;;  %v2058_v7 = vpop.f32.mrb[9].mxu1 }
 0xb09   :  { %v2059_v8 = vpop.f32.mrb[10].mxu1 }
 0xb0a   :  { %v2064_v9 = vadd.f32 %v2063_v5, %v2056_v4  ;;  %v2060_v62 = vpop.f32.mrb[11].mxu1 }
 0xb0c   :  { %v2065_v3 = vrot.slane %v2064_v9, 2 }
 0xb0e   :  { %v2066_v6 = vadd.f32 %v2065_v3, %v2064_v9 }
 0xb10   :  { %v2067_v11 = vrot.slane %v2066_v6, 1 }
 0xb12   :  { %v2068_v13 = vadd.f32 %v2067_v11, %v2066_v6 }
 0xb14   :  { %2985 = vmatmul.mubr.f32.vlgmr.msra.gmra.mrb[40].mxu0 %v2068_v13 }
 0xb15   :  { %3149 = vmatpush3.bf16.msra.mxu0 %v3920_v0  ;;  %3019 = vmatprep.mubr.msk.f32.mxu0 %vm3310_vm2, %v3311_v15 }
 0xb16   :  { %3150 = vmatprep.subr.bf16.mxu0 %v3309_v21 }
 0xb19   :  { %3152 = vmatpush3.bf16.msra.mxu0 %v3926_v10 }
 0xb1a   :  { %3153 = vmatprep.subr.bf16.mxu0 %v3309_v21 }
 0xb1d   :  { %3155 = vmatpush3.bf16.msra.mxu0 %v3936_v12 }
 0xb1e   :  { %3156 = vmatprep.subr.bf16.mxu0 %v3309_v21 }
 0xb21   :  { %3158 = vmatpush3.bf16.msra.mxu0 %v3946_v16 }
 0xb22   :  { %3159 = vmatprep.subr.bf16.mxu0 %v3309_v21 }
 0xb25   :  { %3161 = vmatpush3.bf16.msra.mxu0 %v3956_v19 }
 0xb26   :  { %3162 = vmatprep.subr.bf16.mxu0 %v3309_v21 }
 0xb29   :  { %3164 = vmatpush3.bf16.msra.mxu0 %v3139_v59 }
 0xb2a   :  { %3165 = vmatprep.subr.bf16.mxu0 %v3309_v21 }
 0xb2d   :  { %3167 = vmatpush3.bf16.msra.mxu0 %v3142_v61 }
 0xb2e   :  { %3168 = vmatprep.subr.bf16.mxu0 %v3309_v21 }
 0xb31   :  { %3170 = vmatpush3.bf16.msra.mxu0 %v3145_v2 }
 0xb32   :  { %3022 = vmatprep.subr.mxu0 %v3311_v15 }
 0xbe7   :  { %v2151_v0 = vpop.f32.mrb[40].mxu0 }
 0xbe8   :  { %v2155_v10 = vmul.f32 0.03125, %v2151_v0  ;;  %v2986_v12 = vpop.f32.mrb[41].mxu0 }
 0xbea   :  { %v2159_v14 = vrot.slane %v2155_v10, %v3614_v33 }
 0xbec   :  { %v2160_v16 = vsub.f32 %v2056_v4, %v2159_v14 }
 0xbee   :  { %v2161_v17 = vmul.f32 %v2160_v16, %v2160_v16 }
 0xbf0   :  { %v2162_v18 = vrot.slane %v2161_v17, 4 }
 0xbf2   :  { %v2163_v19 = vadd.f32 %v2162_v18, %v2161_v17 }
 0xbf4   :  { %v2164_v20 = vrot.slane %v2163_v19, 2 }
 0xbf6   :  { %v2165_v23 = vadd.f32 %v2164_v20, %v2163_v19 }
 0xbf8   :  { %v2166_v24 = vrot.slane %v2165_v23, 1 }
 0xbfa   :  { %v2167_v26 = vadd.f32 %v2166_v24, %v2165_v23 }
 0xbfc   :  { %3020 = vmatmul.mubr.f32.vlgmr.msra.gmra.mrb[42].mxu0 %v2167_v26 }
 0xbfd   :  { %3024 = vmatprep.mubr.msk.f32.mxu0 %vm3310_vm2, %v3311_v15  ;;  %v2263_v15 = vld [vmem:[%s4119_s16] sm:$0xff] }
 0xccf   :  { %v2234_v21 = vpop.f32.mrb[42].mxu0 }
 0xcd0   :  { %v2238_v28 = vmul.f32 0.03125, %v2234_v21  ;;  %v3021_v29 = vpop.f32.mrb[43].mxu0 }
 0xcd2   :  { %v2239_v31 = vadd.f32 1e-05, %v2238_v28 }
 0xcd4   :  { %3303 = vrsqrt.f32 %v2239_v31 }
 0xcde   :  { %v3304_v32 = vpop.eup %3303 }
 0xcdf   :  { %v2244_v25 = vrot.slane %v3304_v32, %v3614_v33  ;;  %v2267_v33 = vld [vmem:[%s4120_s17] sm:$0x3] }
 0xce1   :  { %v2245_v30 = vmul.f32 %v2244_v25, %v2160_v16 }
 0xce3   :  { %v2253_v35 = vmul.f32 %v2581_v27, %v2245_v30 }
 0xce5   :  { %v2261_v36 = vadd.f32 %v2582_v34, %v2253_v35 }
 0xce7   :  { %v2262_v37 = vmax.f32 %v2261_v36, 0.0 }
 0xce9   :  { %v2264_v38 = vmul.f32 %v2263_v15, %v2262_v37 }
 0xceb   :  { %2265 = vadd.xlane.f32.xlu0 %v2264_v38 }
 0xd78   :  { %v2266_v39 = vpop.xlane.xlu0 %2265 }
 0xd79   :  { %3023 = vmatpush3.msra.mxu0 %v2266_v39 }
 0xd7a   :  { %3025 = vmatmul.mubr.msk.f32.vlgmr.msra.gmra.mrb[44].mxu0 %vm850_vm14, %v2267_v33 }
 0xe4d   :  { %v2337_v40 = vpop.f32.mrb[44].mxu0 }
 0xe4e   :  { %v2584_v41 = vmul.f32 -1.442695, %v2337_v40  ;;  %v3026_v42 = vpop.f32.mrb[45].mxu0 }
 0xe50   :  { %3305 = vpow2.f32 %v2584_v41 }
 0xe5a   :  { %v3306_v43 = vpop.eup %3305 }
 0xe5b   :  { %v2344_v44 = vadd.f32 1.0, %v3306_v43 }
 0xe5d   :  { %3307 = vrcp.f32 %v2344_v44 }
 0xe67   :  { %v3308_v45 = vpop.eup %3307 }
 0xe68   :  { %2348 = vst.msk [vmem:[%s4121_s18] sm:$0x3] %vm2347_vm1, %v3308_v45 }

</bundles_post_ra>
